<compile_context>
chip_gen: v6e
topology: v6e:2x2x1
jax: 0.10.0
libtpu: 0.0.40
codegen_flags: <defaults>
</compile_context>

<pallas_src>
import jax
import jax.numpy as jnp
from jax import lax
from jax.experimental import pallas as pl
from jax.experimental.pallas import tpu as pltpu


# ------------------------------ fused kernel ----------------------------------
def _downsampling_kernel(x_ref, w1_ref, w2_ref, sh1_ref, sh2_ref, o_ref,
                         p1_ref, p2_ref):
    # x_ref:   (Bt, Hp, 2, Wp, 2*Cin)  input block, pooling pairs pre-split
    # w1_ref:  (9*Cin, Cout)   bf16 im2col conv1 weights (BN1 scale folded in)
    # w2_ref:  (Cout, 9*Cout)  bf16 im2col conv2 weights, transposed-rhs layout
    # sh1_ref: (1, Cout)       BN1 shift
    # sh2_ref: (Cout, 1)       BN2 shift
    # o_ref:   (Bt, Cout*Hp*Wp) flat-NCHW output block (lane-dense store)
    # p1_ref:  (Bt, Hp+2, Wp+2, Cin)   VMEM scratch: zero-padded pooled input
    # p2_ref:  (Bt, Hp+2, Wp+2, Cout)  VMEM scratch: zero-padded conv1 act.
    bt, hp2, wp2, cin = p1_ref.shape
    hp, wp = hp2 - 2, wp2 - 2
    cout = p2_ref.shape[3]
    m = bt * hp * wp

    # ---------------- MaxPool2d(2,2): pair-axis max + lane-half max -----------
    xb = x_ref[...]                                          # (bt, hp, 2, wp, 2*cin)
    rows = jnp.maximum(xb[:, :, 0], xb[:, :, 1])             # (bt, hp, wp, 2*cin)
    pooled = jnp.maximum(rows[..., :cin], rows[..., cin:])   # (bt, hp, wp, cin)

    # zero only the 1-wide halo (interior overwritten below); cheap every step
    p1_ref[:, pl.ds(0, 1), :, :] = jnp.zeros((bt, 1, wp2, cin), jnp.float32)
    p1_ref[:, pl.ds(hp + 1, 1), :, :] = jnp.zeros((bt, 1, wp2, cin), jnp.float32)
    p1_ref[:, :, pl.ds(0, 1), :] = jnp.zeros((bt, hp2, 1, cin), jnp.float32)
    p1_ref[:, :, pl.ds(wp + 1, 1), :] = jnp.zeros((bt, hp2, 1, cin), jnp.float32)
    p1_ref[:, pl.ds(1, hp), pl.ds(1, wp), :] = pooled

    # ---------------- Conv1 (3x3, pad=1) as ONE im2col matmul + BN1 + ReLU -----
    taps1 = [p1_ref[:, pl.ds(dy, hp), pl.ds(dx, wp), :]
             for dy in range(3) for dx in range(3)]
    patch1 = jnp.concatenate(taps1, axis=-1)                 # (bt, hp, wp, 9*cin)
    patch1 = patch1.reshape(m, 9 * cin).astype(jnp.bfloat16)
    act1 = jnp.dot(patch1, w1_ref[...],
                   preferred_element_type=jnp.float32)       # (m, cout)
    act1 = jnp.maximum(act1 + sh1_ref[...], 0.0)

    # zero-padded conv1 activation kept in VMEM (halo-only zeroing again)
    p2_ref[:, pl.ds(0, 1), :, :] = jnp.zeros((bt, 1, wp2, cout), jnp.float32)
    p2_ref[:, pl.ds(hp + 1, 1), :, :] = jnp.zeros((bt, 1, wp2, cout), jnp.float32)
    p2_ref[:, :, pl.ds(0, 1), :] = jnp.zeros((bt, hp2, 1, cout), jnp.float32)
    p2_ref[:, :, pl.ds(wp + 1, 1), :] = jnp.zeros((bt, hp2, 1, cout), jnp.float32)
    p2_ref[:, pl.ds(1, hp), pl.ds(1, wp), :] = act1.reshape(bt, hp, wp, cout)

    # ---------------- Conv2 (3x3, pad=1) im2col, channel-first + BN2 + ReLU ----
    taps2 = [p2_ref[:, pl.ds(dy, hp), pl.ds(dx, wp), :]
             for dy in range(3) for dx in range(3)]
    patch2 = jnp.concatenate(taps2, axis=-1).reshape(m, 9 * cout)
    patch2 = patch2.astype(jnp.bfloat16)
    out2 = lax.dot_general(w2_ref[...], patch2,
                           dimension_numbers=(((1,), (1,)), ((), ())),
                           preferred_element_type=jnp.float32)   # (cout, m)
    out2 = jnp.maximum(out2 + sh2_ref[...], 0.0)

    # -> flat NCHW (bt, cout*hp*wp) for a lane-dense store
    if bt == 1:
        out3 = out2.reshape(1, cout * hp * wp)
    else:
        out3 = out2.reshape(cout, bt, hp * wp).transpose(1, 0, 2)
        out3 = out3.reshape(bt, cout * hp * wp)
    o_ref[...] = out3.astype(o_ref.dtype)


# ------------------------------ module forward ---------------------------------
def _pick_bt(n, hpwp, target_rows=256):
    """Largest divisor of n with bt*hp*wp <= target MXU rows."""
    bt = 1
    for d in range(1, n + 1):
        if n % d == 0 and d * hpwp <= target_rows:
            bt = d
    return bt


@jax.jit
def downsampling_forward(x_nchw, params):
    n, cin, h, w = x_nchw.shape
    assert h % 2 == 0 and w % 2 == 0, "MaxPool2d(2,2) path assumes even H, W"
    hp, wp = h // 2, w // 2
    cout = params["w1"].shape[-1]
    bt = _pick_bt(n, hp * wp)

    # NCHW -> NHWC -> (n, hp, 2, wp, 2*cin): layout-preserving reshapes only.
    x5 = jnp.transpose(x_nchw, (0, 2, 3, 1)).reshape(n, hp, 2, wp, 2 * cin)

    # VMEM budget: double-buffered in/out blocks + resident weights + scratch.
    blk_in = bt * h * w * cin * 4
    blk_out = bt * cout * hp * wp * 4
    wts = (9 * cin * cout + 9 * cout * cout) * 2 + 2 * cout * 4
    scratch = bt * (hp + 2) * (wp + 2) * (cin + cout) * 4
    need = 4 * (blk_in + blk_out) + 2 * wts + 2 * scratch
    vmem_limit = int(min(96 * 1024 * 1024, max(32 * 1024 * 1024, need)))

    out_flat = pl.pallas_call(
        _downsampling_kernel,
        grid=(n // bt,),
        in_specs=[
            pl.BlockSpec((bt, hp, 2, wp, 2 * cin), lambda i: (i, 0, 0, 0, 0)),
            pl.BlockSpec((9 * cin, cout), lambda i: (0, 0)),
            pl.BlockSpec((cout, 9 * cout), lambda i: (0, 0)),
            pl.BlockSpec((1, cout), lambda i: (0, 0)),
            pl.BlockSpec((cout, 1), lambda i: (0, 0)),
        ],
        out_specs=pl.BlockSpec((bt, cout * hp * wp), lambda i: (i, 0)),
        out_shape=jax.ShapeDtypeStruct((n, cout * hp * wp), x_nchw.dtype),
        scratch_shapes=[
            pltpu.VMEM((bt, hp + 2, wp + 2, cin), jnp.float32),
            pltpu.VMEM((bt, hp + 2, wp + 2, cout), jnp.float32),
        ],
        compiler_params=pltpu.CompilerParams(
            dimension_semantics=("parallel",),
            vmem_limit_bytes=vmem_limit),
    )(x5, params["w1"], params["w2"], params["shift1"], params["shift2"])

    # (n, cout*hp*wp) -> (n, cout, hp, wp): layout-preserving, free.
    return out_flat.reshape(n, cout, hp, wp)


# ----------------------------- parameter setup ---------------------------------
def init_params(key, in_channels, out_channels, eps=1e-5):
    k1, k2, k3, k4, k5, k6 = jax.random.split(key, 6)

    def conv_w(k, cin, cout):
        bound = 1.0 / jnp.sqrt(cin * 9.0)
        # PyTorch Conv2d layout (out, in, kh, kw), bias=False as in the module
        return jax.random.uniform(k, (cout, cin, 3, 3), jnp.float32, -bound, bound)

    def bn_fold(kg, kb, c):
        gamma = 1.0 + 0.1 * jax.random.normal(kg, (c,), jnp.float32)
        beta = 0.1 * jax.random.normal(kb, (c,), jnp.float32)
        running_mean = jnp.zeros((c,), jnp.float32)
        running_var = jnp.ones((c,), jnp.float32)
        scale = gamma / jnp.sqrt(running_var + eps)
        shift = beta - running_mean * scale
        return scale, shift

    w1_t = conv_w(k1, in_channels, out_channels)
    w2_t = conv_w(k4, out_channels, out_channels)
    s1, b1 = bn_fold(k2, k3, out_channels)
    s2, b2 = bn_fold(k5, k6, out_channels)

    # Fold BN scale into the conv weights, then round to bf16 (MXU-native).
    # The SAME rounded weights (upcast to f32) are used by the reference.
    w1_fold = (w1_t * s1[:, None, None, None]).astype(jnp.bfloat16)  # OIHW
    w2_fold = (w2_t * s2[:, None, None, None]).astype(jnp.bfloat16)  # OIHW

    # conv1 im2col weights: (9*cin, cout), row = (kh*3+kw)*cin + ci
    w1p = jnp.transpose(w1_fold, (2, 3, 1, 0)).reshape(9 * in_channels, out_channels)
    # conv2 im2col weights, transposed-rhs: (cout, 9*cmid), col = (kh*3+kw)*cmid + ci
    w2p = jnp.transpose(w2_fold, (0, 2, 3, 1)).reshape(out_channels, 9 * out_channels)

    kernel_params = dict(w1=w1p, w2=w2p, shift1=b1[None, :], shift2=b2[:, None])
    ref_params = dict(w1=w1_fold.astype(jnp.float32), shift1=b1,
                      w2=w2_fold.astype(jnp.float32), shift2=b2)
    return kernel_params, ref_params


# --------------------------- pure-JAX reference --------------------------------
def downsampling_reference(x_nchw, ref):
    x = lax.reduce_window(x_nchw, -jnp.inf, lax.max,
                          (1, 1, 2, 2), (1, 1, 2, 2), "VALID")

    def conv_bn_relu(x, w, shift):
        y = lax.conv_general_dilated(
            x, w, window_strides=(1, 1), padding=((1, 1), (1, 1)),
            dimension_numbers=("NCHW", "OIHW", "NCHW"),
            precision=lax.Precision.HIGHEST)
        return jnp.maximum(y + shift[None, :, None, None], 0.0)

    x = conv_bn_relu(x, ref["w1"], ref["shift1"])
    x = conv_bn_relu(x, ref["w2"], ref["shift2"])
    return x


if __name__ == "__main__":
    key = jax.random.PRNGKey(0)
    kx, kp = jax.random.split(key)

    in_channels, out_channels = 4, 8
    x = jax.random.normal(kx, (2, in_channels, 16, 16), jnp.float32)  # NCHW like PyTorch
    params, ref_params = init_params(kp, in_channels, out_channels)

    y = downsampling_forward(x, params)
    jax.block_until_ready(y)

    assert y.shape == (2, out_channels, 8, 8), y.shape
    assert bool(jnp.all(y >= 0.0))  # ReLU output is non-negative

    y_ref = downsampling_reference(x, ref_params)
    assert y_ref.shape == y.shape
    max_err = float(jnp.max(jnp.abs(y - y_ref)))
    # bf16 matmul operands (f32 accumulation) -> small rounding diff vs f32 ref
    assert bool(jnp.allclose(y, y_ref, atol=2e-2, rtol=2e-2)), max_err

    print("KERNEL_OK")
</pallas_src>

<mosaic_0001>
module attributes {stable_mosaic.version = 11 : i64} {
  func.func @_downsampling_kernel(%arg0: i32, %arg1: memref<2x8x2x8x8xf32, #tpu.memory_space<vmem>>, %arg2: memref<36x8xbf16, #tpu.memory_space<vmem>>, %arg3: memref<8x72xbf16, #tpu.memory_space<vmem>>, %arg4: memref<1x8xf32, #tpu.memory_space<vmem>>, %arg5: memref<8x1xf32, #tpu.memory_space<vmem>>, %arg6: memref<2x512xf32, #tpu.memory_space<vmem>>, %arg7: memref<2x10x10x4xf32, #tpu.memory_space<vmem>>, %arg8: memref<2x10x10x8xf32, #tpu.memory_space<vmem>>) attributes {dimension_semantics = [#tpu.dimension_semantics<parallel>], iteration_bounds = array<i64: 1>, scalar_prefetch = 0 : i64, scratch_operands = 2 : i64, tpu.core_type = #tpu.core_type<tc>, window_params = [{transform_indices = @transform_0, window_bounds = array<i64: 2, 8, 2, 8, 8>}, {pipeline_mode = #tpu.pipeline_mode<synchronous>, transform_indices = @transform_1, window_bounds = array<i64: 36, 8>}, {pipeline_mode = #tpu.pipeline_mode<synchronous>, transform_indices = @transform_2, window_bounds = array<i64: 8, 72>}, {pipeline_mode = #tpu.pipeline_mode<synchronous>, transform_indices = @transform_3, window_bounds = array<i64: 1, 8>}, {pipeline_mode = #tpu.pipeline_mode<synchronous>, transform_indices = @transform_4, window_bounds = array<i64: 8, 1>}, {transform_indices = @transform_5, window_bounds = array<i64: 2, 512>}]} {
    %c0 = arith.constant 0 : index
    %c0_0 = arith.constant 0 : index
    %c0_1 = arith.constant 0 : index
    %c0_2 = arith.constant 0 : index
    %c0_3 = arith.constant 0 : index
    %0 = vector.load %arg1[%c0, %c0_0, %c0_1, %c0_2, %c0_3] : memref<2x8x2x8x8xf32, #tpu.memory_space<vmem>>, vector<2x8x2x8x8xf32>
    %1 = vector.extract_strided_slice %0 {offsets = [0, 0, 0, 0, 0], sizes = [2, 8, 1, 8, 8], strides = [1, 1, 1, 1, 1]} : vector<2x8x2x8x8xf32> to vector<2x8x1x8x8xf32>
    %2 = vector.shape_cast %1 : vector<2x8x1x8x8xf32> to vector<2x8x8x8xf32>
    %3 = vector.extract_strided_slice %0 {offsets = [0, 0, 1, 0, 0], sizes = [2, 8, 1, 8, 8], strides = [1, 1, 1, 1, 1]} : vector<2x8x2x8x8xf32> to vector<2x8x1x8x8xf32>
    %4 = vector.shape_cast %3 : vector<2x8x1x8x8xf32> to vector<2x8x8x8xf32>
    %5 = arith.maximumf %2, %4 : vector<2x8x8x8xf32>
    %6 = vector.extract_strided_slice %5 {offsets = [0, 0, 0, 0], sizes = [2, 8, 8, 4], strides = [1, 1, 1, 1]} : vector<2x8x8x8xf32> to vector<2x8x8x4xf32>
    %7 = vector.extract_strided_slice %5 {offsets = [0, 0, 0, 4], sizes = [2, 8, 8, 4], strides = [1, 1, 1, 1]} : vector<2x8x8x8xf32> to vector<2x8x8x4xf32>
    %8 = arith.maximumf %6, %7 : vector<2x8x8x4xf32>
    %cst = arith.constant 0.000000e+00 : f32
    %9 = vector.broadcast %cst : f32 to vector<2x1x10x4xf32>
    %c0_4 = arith.constant 0 : index
    %c0_5 = arith.constant 0 : index
    %c0_6 = arith.constant 0 : index
    %c0_7 = arith.constant 0 : index
    %10 = vector.load %arg7[%c0_4, %c0_5, %c0_6, %c0_7] : memref<2x10x10x4xf32, #tpu.memory_space<vmem>>, vector<2x1x10x4xf32>
    tpu.vector_store %arg7[%c0_4, %c0_5, %c0_6, %c0_7], %9 {strides = array<i32>} : memref<2x10x10x4xf32, #tpu.memory_space<vmem>>, vector<2x1x10x4xf32>,
    %cst_8 = arith.constant 0.000000e+00 : f32
    %11 = vector.broadcast %cst_8 : f32 to vector<2x1x10x4xf32>
    %c0_9 = arith.constant 0 : index
    %c9 = arith.constant 9 : index
    %c0_10 = arith.constant 0 : index
    %c0_11 = arith.constant 0 : index
    %12 = vector.load %arg7[%c0_9, %c9, %c0_10, %c0_11] : memref<2x10x10x4xf32, #tpu.memory_space<vmem>>, vector<2x1x10x4xf32>
    tpu.vector_store %arg7[%c0_9, %c9, %c0_10, %c0_11], %11 {strides = array<i32>} : memref<2x10x10x4xf32, #tpu.memory_space<vmem>>, vector<2x1x10x4xf32>,
    %cst_12 = arith.constant 0.000000e+00 : f32
    %13 = vector.broadcast %cst_12 : f32 to vector<2x10x1x4xf32>
    %c0_13 = arith.constant 0 : index
    %c0_14 = arith.constant 0 : index
    %c0_15 = arith.constant 0 : index
    %c0_16 = arith.constant 0 : index
    %14 = vector.load %arg7[%c0_13, %c0_14, %c0_15, %c0_16] : memref<2x10x10x4xf32, #tpu.memory_space<vmem>>, vector<2x10x1x4xf32>
    tpu.vector_store %arg7[%c0_13, %c0_14, %c0_15, %c0_16], %13 {strides = array<i32>} : memref<2x10x10x4xf32, #tpu.memory_space<vmem>>, vector<2x10x1x4xf32>,
    %cst_17 = arith.constant 0.000000e+00 : f32
    %15 = vector.broadcast %cst_17 : f32 to vector<2x10x1x4xf32>
    %c0_18 = arith.constant 0 : index
    %c0_19 = arith.constant 0 : index
    %c9_20 = arith.constant 9 : index
    %c0_21 = arith.constant 0 : index
    %16 = vector.load %arg7[%c0_18, %c0_19, %c9_20, %c0_21] : memref<2x10x10x4xf32, #tpu.memory_space<vmem>>, vector<2x10x1x4xf32>
    tpu.vector_store %arg7[%c0_18, %c0_19, %c9_20, %c0_21], %15 {strides = array<i32>} : memref<2x10x10x4xf32, #tpu.memory_space<vmem>>, vector<2x10x1x4xf32>,
    %c0_22 = arith.constant 0 : index
    %c1 = arith.constant 1 : index
    %c1_23 = arith.constant 1 : index
    %c0_24 = arith.constant 0 : index
    %17 = vector.load %arg7[%c0_22, %c1, %c1_23, %c0_24] : memref<2x10x10x4xf32, #tpu.memory_space<vmem>>, vector<2x8x8x4xf32>
    tpu.vector_store %arg7[%c0_22, %c1, %c1_23, %c0_24], %8 {strides = array<i32>} : memref<2x10x10x4xf32, #tpu.memory_space<vmem>>, vector<2x8x8x4xf32>,
    %c0_25 = arith.constant 0 : index
    %c0_26 = arith.constant 0 : index
    %c0_27 = arith.constant 0 : index
    %c0_28 = arith.constant 0 : index
    %18 = vector.load %arg7[%c0_25, %c0_26, %c0_27, %c0_28] : memref<2x10x10x4xf32, #tpu.memory_space<vmem>>, vector<2x8x8x4xf32>
    %c0_29 = arith.constant 0 : index
    %c0_30 = arith.constant 0 : index
    %c1_31 = arith.constant 1 : index
    %c0_32 = arith.constant 0 : index
    %19 = vector.load %arg7[%c0_29, %c0_30, %c1_31, %c0_32] : memref<2x10x10x4xf32, #tpu.memory_space<vmem>>, vector<2x8x8x4xf32>
    %c0_33 = arith.constant 0 : index
    %c0_34 = arith.constant 0 : index
    %c2 = arith.constant 2 : index
    %c0_35 = arith.constant 0 : index
    %20 = vector.load %arg7[%c0_33, %c0_34, %c2, %c0_35] : memref<2x10x10x4xf32, #tpu.memory_space<vmem>>, vector<2x8x8x4xf32>
    %c0_36 = arith.constant 0 : index
    %c1_37 = arith.constant 1 : index
    %c0_38 = arith.constant 0 : index
    %c0_39 = arith.constant 0 : index
    %21 = vector.load %arg7[%c0_36, %c1_37, %c0_38, %c0_39] : memref<2x10x10x4xf32, #tpu.memory_space<vmem>>, vector<2x8x8x4xf32>
    %c0_40 = arith.constant 0 : index
    %c1_41 = arith.constant 1 : index
    %c1_42 = arith.constant 1 : index
    %c0_43 = arith.constant 0 : index
    %22 = vector.load %arg7[%c0_40, %c1_41, %c1_42, %c0_43] : memref<2x10x10x4xf32, #tpu.memory_space<vmem>>, vector<2x8x8x4xf32>
    %c0_44 = arith.constant 0 : index
    %c1_45 = arith.constant 1 : index
    %c2_46 = arith.constant 2 : index
    %c0_47 = arith.constant 0 : index
    %23 = vector.load %arg7[%c0_44, %c1_45, %c2_46, %c0_47] : memref<2x10x10x4xf32, #tpu.memory_space<vmem>>, vector<2x8x8x4xf32>
    %c0_48 = arith.constant 0 : index
    %c2_49 = arith.constant 2 : index
    %c0_50 = arith.constant 0 : index
    %c0_51 = arith.constant 0 : index
    %24 = vector.load %arg7[%c0_48, %c2_49, %c0_50, %c0_51] : memref<2x10x10x4xf32, #tpu.memory_space<vmem>>, vector<2x8x8x4xf32>
    %c0_52 = arith.constant 0 : index
    %c2_53 = arith.constant 2 : index
    %c1_54 = arith.constant 1 : index
    %c0_55 = arith.constant 0 : index
    %25 = vector.load %arg7[%c0_52, %c2_53, %c1_54, %c0_55] : memref<2x10x10x4xf32, #tpu.memory_space<vmem>>, vector<2x8x8x4xf32>
    %c0_56 = arith.constant 0 : index
    %c2_57 = arith.constant 2 : index
    %c2_58 = arith.constant 2 : index
    %c0_59 = arith.constant 0 : index
    %26 = vector.load %arg7[%c0_56, %c2_57, %c2_58, %c0_59] : memref<2x10x10x4xf32, #tpu.memory_space<vmem>>, vector<2x8x8x4xf32>
    %27 = tpu.concatenate %18, %19, %20, %21, %22, %23, %24, %25, %26 in 3 : vector<2x8x8x4xf32>, vector<2x8x8x4xf32>, vector<2x8x8x4xf32>, vector<2x8x8x4xf32>, vector<2x8x8x4xf32>, vector<2x8x8x4xf32>, vector<2x8x8x4xf32>, vector<2x8x8x4xf32>, vector<2x8x8x4xf32> -> vector<2x8x8x36xf32>
    %28 = vector.shape_cast %27 : vector<2x8x8x36xf32> to vector<128x36xf32>
    %29 = arith.truncf %28 : vector<128x36xf32> to vector<128x36xbf16>
    %c0_60 = arith.constant 0 : index
    %c0_61 = arith.constant 0 : index
    %30 = vector.load %arg2[%c0_60, %c0_61] : memref<36x8xbf16, #tpu.memory_space<vmem>>, vector<36x8xbf16>
    %cst_62 = arith.constant dense<0.000000e+00> : vector<128x8xf32>
    %31 = tpu.matmul %29, %30, %cst_62 {dimension_numbers = #tpu.dot_dimension_numbers<[1], [0], [0], [1], [0, 0, 1, 1], [], []>} : vector<128x36xbf16>, vector<36x8xbf16>, vector<128x8xf32> -> vector<128x8xf32>
    %c0_63 = arith.constant 0 : index
    %c0_64 = arith.constant 0 : index
    %32 = vector.load %arg4[%c0_63, %c0_64] : memref<1x8xf32, #tpu.memory_space<vmem>>, vector<1x8xf32>
    %33 = vector.broadcast %32 : vector<1x8xf32> to vector<128x8xf32>
    %34 = arith.addf %31, %33 : vector<128x8xf32>
    %cst_65 = arith.constant 0.000000e+00 : f32
    %35 = vector.broadcast %cst_65 : f32 to vector<128x8xf32>
    %36 = arith.maximumf %34, %35 : vector<128x8xf32>
    %cst_66 = arith.constant 0.000000e+00 : f32
    %37 = vector.broadcast %cst_66 : f32 to vector<2x1x10x8xf32>
    %c0_67 = arith.constant 0 : index
    %c0_68 = arith.constant 0 : index
    %c0_69 = arith.constant 0 : index
    %c0_70 = arith.constant 0 : index
    %38 = vector.load %arg8[%c0_67, %c0_68, %c0_69, %c0_70] : memref<2x10x10x8xf32, #tpu.memory_space<vmem>>, vector<2x1x10x8xf32>
    tpu.vector_store %arg8[%c0_67, %c0_68, %c0_69, %c0_70], %37 {strides = array<i32>} : memref<2x10x10x8xf32, #tpu.memory_space<vmem>>, vector<2x1x10x8xf32>,
    %cst_71 = arith.constant 0.000000e+00 : f32
    %39 = vector.broadcast %cst_71 : f32 to vector<2x1x10x8xf32>
    %c0_72 = arith.constant 0 : index
    %c9_73 = arith.constant 9 : index
    %c0_74 = arith.constant 0 : index
    %c0_75 = arith.constant 0 : index
    %40 = vector.load %arg8[%c0_72, %c9_73, %c0_74, %c0_75] : memref<2x10x10x8xf32, #tpu.memory_space<vmem>>, vector<2x1x10x8xf32>
    tpu.vector_store %arg8[%c0_72, %c9_73, %c0_74, %c0_75], %39 {strides = array<i32>} : memref<2x10x10x8xf32, #tpu.memory_space<vmem>>, vector<2x1x10x8xf32>,
    %cst_76 = arith.constant 0.000000e+00 : f32
    %41 = vector.broadcast %cst_76 : f32 to vector<2x10x1x8xf32>
    %c0_77 = arith.constant 0 : index
    %c0_78 = arith.constant 0 : index
    %c0_79 = arith.constant 0 : index
    %c0_80 = arith.constant 0 : index
    %42 = vector.load %arg8[%c0_77, %c0_78, %c0_79, %c0_80] : memref<2x10x10x8xf32, #tpu.memory_space<vmem>>, vector<2x10x1x8xf32>
    tpu.vector_store %arg8[%c0_77, %c0_78, %c0_79, %c0_80], %41 {strides = array<i32>} : memref<2x10x10x8xf32, #tpu.memory_space<vmem>>, vector<2x10x1x8xf32>,
    %cst_81 = arith.constant 0.000000e+00 : f32
    %43 = vector.broadcast %cst_81 : f32 to vector<2x10x1x8xf32>
    %c0_82 = arith.constant 0 : index
    %c0_83 = arith.constant 0 : index
    %c9_84 = arith.constant 9 : index
    %c0_85 = arith.constant 0 : index
    %44 = vector.load %arg8[%c0_82, %c0_83, %c9_84, %c0_85] : memref<2x10x10x8xf32, #tpu.memory_space<vmem>>, vector<2x10x1x8xf32>
    tpu.vector_store %arg8[%c0_82, %c0_83, %c9_84, %c0_85], %43 {strides = array<i32>} : memref<2x10x10x8xf32, #tpu.memory_space<vmem>>, vector<2x10x1x8xf32>,
    %45 = vector.shape_cast %36 : vector<128x8xf32> to vector<2x8x8x8xf32>
    %c0_86 = arith.constant 0 : index
    %c1_87 = arith.constant 1 : index
    %c1_88 = arith.constant 1 : index
    %c0_89 = arith.constant 0 : index
    %46 = vector.load %arg8[%c0_86, %c1_87, %c1_88, %c0_89] : memref<2x10x10x8xf32, #tpu.memory_space<vmem>>, vector<2x8x8x8xf32>
    tpu.vector_store %arg8[%c0_86, %c1_87, %c1_88, %c0_89], %45 {strides = array<i32>} : memref<2x10x10x8xf32, #tpu.memory_space<vmem>>, vector<2x8x8x8xf32>,
    %c0_90 = arith.constant 0 : index
    %c0_91 = arith.constant 0 : index
    %c0_92 = arith.constant 0 : index
    %c0_93 = arith.constant 0 : index
    %47 = vector.load %arg8[%c0_90, %c0_91, %c0_92, %c0_93] : memref<2x10x10x8xf32, #tpu.memory_space<vmem>>, vector<2x8x8x8xf32>
    %c0_94 = arith.constant 0 : index
    %c0_95 = arith.constant 0 : index
    %c1_96 = arith.constant 1 : index
    %c0_97 = arith.constant 0 : index
    %48 = vector.load %arg8[%c0_94, %c0_95, %c1_96, %c0_97] : memref<2x10x10x8xf32, #tpu.memory_space<vmem>>, vector<2x8x8x8xf32>
    %c0_98 = arith.constant 0 : index
    %c0_99 = arith.constant 0 : index
    %c2_100 = arith.constant 2 : index
    %c0_101 = arith.constant 0 : index
    %49 = vector.load %arg8[%c0_98, %c0_99, %c2_100, %c0_101] : memref<2x10x10x8xf32, #tpu.memory_space<vmem>>, vector<2x8x8x8xf32>
    %c0_102 = arith.constant 0 : index
    %c1_103 = arith.constant 1 : index
    %c0_104 = arith.constant 0 : index
    %c0_105 = arith.constant 0 : index
    %50 = vector.load %arg8[%c0_102, %c1_103, %c0_104, %c0_105] : memref<2x10x10x8xf32, #tpu.memory_space<vmem>>, vector<2x8x8x8xf32>
    %c0_106 = arith.constant 0 : index
    %c1_107 = arith.constant 1 : index
    %c1_108 = arith.constant 1 : index
    %c0_109 = arith.constant 0 : index
    %51 = vector.load %arg8[%c0_106, %c1_107, %c1_108, %c0_109] : memref<2x10x10x8xf32, #tpu.memory_space<vmem>>, vector<2x8x8x8xf32>
    %c0_110 = arith.constant 0 : index
    %c1_111 = arith.constant 1 : index
    %c2_112 = arith.constant 2 : index
    %c0_113 = arith.constant 0 : index
    %52 = vector.load %arg8[%c0_110, %c1_111, %c2_112, %c0_113] : memref<2x10x10x8xf32, #tpu.memory_space<vmem>>, vector<2x8x8x8xf32>
    %c0_114 = arith.constant 0 : index
    %c2_115 = arith.constant 2 : index
    %c0_116 = arith.constant 0 : index
    %c0_117 = arith.constant 0 : index
    %53 = vector.load %arg8[%c0_114, %c2_115, %c0_116, %c0_117] : memref<2x10x10x8xf32, #tpu.memory_space<vmem>>, vector<2x8x8x8xf32>
    %c0_118 = arith.constant 0 : index
    %c2_119 = arith.constant 2 : index
    %c1_120 = arith.constant 1 : index
    %c0_121 = arith.constant 0 : index
    %54 = vector.load %arg8[%c0_118, %c2_119, %c1_120, %c0_121] : memref<2x10x10x8xf32, #tpu.memory_space<vmem>>, vector<2x8x8x8xf32>
    %c0_122 = arith.constant 0 : index
    %c2_123 = arith.constant 2 : index
    %c2_124 = arith.constant 2 : index
    %c0_125 = arith.constant 0 : index
    %55 = vector.load %arg8[%c0_122, %c2_123, %c2_124, %c0_125] : memref<2x10x10x8xf32, #tpu.memory_space<vmem>>, vector<2x8x8x8xf32>
    %56 = tpu.concatenate %47, %48, %49, %50, %51, %52, %53, %54, %55 in 3 : vector<2x8x8x8xf32>, vector<2x8x8x8xf32>, vector<2x8x8x8xf32>, vector<2x8x8x8xf32>, vector<2x8x8x8xf32>, vector<2x8x8x8xf32>, vector<2x8x8x8xf32>, vector<2x8x8x8xf32>, vector<2x8x8x8xf32> -> vector<2x8x8x72xf32>
    %57 = vector.shape_cast %56 : vector<2x8x8x72xf32> to vector<128x72xf32>
    %58 = arith.truncf %57 : vector<128x72xf32> to vector<128x72xbf16>
    %c0_126 = arith.constant 0 : index
    %c0_127 = arith.constant 0 : index
    %59 = vector.load %arg3[%c0_126, %c0_127] : memref<8x72xbf16, #tpu.memory_space<vmem>>, vector<8x72xbf16>
    %cst_128 = arith.constant dense<0.000000e+00> : vector<8x128xf32>
    %60 = tpu.matmul %59, %58, %cst_128 {dimension_numbers = #tpu.dot_dimension_numbers<[1], [1], [0], [0], [0, 0, 1, 0], [], []>} : vector<8x72xbf16>, vector<128x72xbf16>, vector<8x128xf32> -> vector<8x128xf32>
    %c0_129 = arith.constant 0 : index
    %c0_130 = arith.constant 0 : index
    %61 = vector.load %arg5[%c0_129, %c0_130] : memref<8x1xf32, #tpu.memory_space<vmem>>, vector<8x1xf32>
    %62 = vector.broadcast %61 : vector<8x1xf32> to vector<8x128xf32>
    %63 = arith.addf %60, %62 : vector<8x128xf32>
    %cst_131 = arith.constant 0.000000e+00 : f32
    %64 = vector.broadcast %cst_131 : f32 to vector<8x128xf32>
    %65 = arith.maximumf %63, %64 : vector<8x128xf32>
    %66 = vector.shape_cast %65 : vector<8x128xf32> to vector<8x2x64xf32>
    %67 = tpu.transpose %66, [1, 0, 2] : vector<8x2x64xf32> -> vector<2x8x64xf32>
    %68 = vector.shape_cast %67 : vector<2x8x64xf32> to vector<2x512xf32>
    %c0_132 = arith.constant 0 : index
    %c0_133 = arith.constant 0 : index
    %69 = vector.load %arg6[%c0_132, %c0_133] : memref<2x512xf32, #tpu.memory_space<vmem>>, vector<2x512xf32>
    tpu.vector_store %arg6[%c0_132, %c0_133], %68 {strides = array<i32>} : memref<2x512xf32, #tpu.memory_space<vmem>>, vector<2x512xf32>,
    return
  }
  func.func @transform_0(%arg0: i32) -> (i32, i32, i32, i32, i32) {
    %c0_i32 = arith.constant 0 : i32
    %c0_i32_0 = arith.constant 0 : i32
    %c0_i32_1 = arith.constant 0 : i32
    %c0_i32_2 = arith.constant 0 : i32
    %c0_i32_3 = arith.constant 0 : i32
    return %arg0, %c0_i32, %c0_i32_0, %c0_i32_1, %c0_i32_2 : i32, i32, i32, i32, i32
  }
  func.func @transform_1(%arg0: i32) -> (i32, i32) {
    %c0_i32 = arith.constant 0 : i32
    %c0_i32_0 = arith.constant 0 : i32
    %c0_i32_1 = arith.constant 0 : i32
    return %c0_i32, %c0_i32_0 : i32, i32
  }
  func.func @transform_2(%arg0: i32) -> (i32, i32) {
    %c0_i32 = arith.constant 0 : i32
    %c0_i32_0 = arith.constant 0 : i32
    %c0_i32_1 = arith.constant 0 : i32
    return %c0_i32, %c0_i32_0 : i32, i32
  }
  func.func @transform_3(%arg0: i32) -> (i32, i32) {
    %c0_i32 = arith.constant 0 : i32
    %c0_i32_0 = arith.constant 0 : i32
    %c0_i32_1 = arith.constant 0 : i32
    return %c0_i32, %c0_i32_0 : i32, i32
  }
  func.func @transform_4(%arg0: i32) -> (i32, i32) {
    %c0_i32 = arith.constant 0 : i32
    %c0_i32_0 = arith.constant 0 : i32
    %c0_i32_1 = arith.constant 0 : i32
    return %c0_i32, %c0_i32_0 : i32, i32
  }
  func.func @transform_5(%arg0: i32) -> (i32, i32) {
    %c0_i32 = arith.constant 0 : i32
    %c0_i32_0 = arith.constant 0 : i32
    return %arg0, %c0_i32 : i32, i32
  }
}

</mosaic_0001>

<bundles_post_ra>
// kernel: downsampling_forward.1
= control target key start
LH: loop header
LB: loop body
LE: loop exit
PB: predicated region body
PF: predicated region fallthrough
CT: control target
= control target key end

     0   :  { %vm149_vm0 = vcmask 31744   ;;  %vm151_vm1 = vcmask 25600   ;;  %vm160_vm2 = vcmask 24576   ;;  %v3102_v3 = vmov 0.0   ;;  %s3103_s9 = smov 124   ;;  %s3106_s10 = smov 12   ;;  %s4288_s0 = inlined_call_operand.vmem [shape: f32[2,8,2,8,8], index: 0, kind: input, shape index: {}]   ;;  %s4289_s1 = inlined_call_operand.vmem [shape: bf16[36,8], index: 1, kind: input, shape index: {}]   ;;  %s4290_s3 = inlined_call_operand.vmem [shape: f32[1,8], index: 3, kind: input, shape index: {}]   ;;  %s4291_s4 = inlined_call_operand.vmem [shape: f32[8,1], index: 4, kind: input, shape index: {}]   ;;  %s4292_s2 = inlined_call_operand.vmem [shape: bf16[8,72], index: 2, kind: input, shape index: {}]   ;;  %s4293_s5 = inlined_call_operand.vmem [shape: f32[2,512], index: 5, kind: output, shape index: {}]  }
   0x1   :  { %v25_v0 = vld [vmem:[%s4288_s0 + $0x20] sm:$0xff]  ;;  %v26_v1 = vld [vmem:[%s4288_s0 + $0x28] sm:$0xff]  ;;  %150 = vst.msk [vmem:[#allocation2] sm:$0xff] %vm149_vm0, %v3102_v3  ;;  %153 = vst.msk [vmem:[#allocation2 + $0xa0] sm:$0xff] %vm149_vm0, %v3102_v3  ;;  %2419 = vmatprep.subr.bf16.mxu1 %v3102_v3  ;;  %vm891_vm3 = vcmask 64512   ;;  %s3107_s13 = smov 16  }
   0x2   :  { %v21_v2 = vld [vmem:[%s4288_s0] sm:$0xff]  ;;  %152 = vst.msk [vmem:[#allocation2 + $0x8] sm:$0x3] %vm151_vm1, %v3102_v3  ;;  %154 = vst.msk [vmem:[#allocation2 + $0xa8] sm:$0x3] %vm151_vm1, %v3102_v3  ;;  %v3236_v4 = vmax.f32 %v25_v0, %v26_v1  ;;  %v22_v5 = vld [vmem:[%s4288_s0 + $0x8] sm:$0xff] }
   0x3   :  { %156 = vst.msk [vmem:[#allocation2 + $0x90] sm:$0xff] %vm149_vm0, %v3102_v3  ;;  %158 = vst.msk [vmem:[#allocation2 + $0x130] sm:$0xff] %vm149_vm0, %v3102_v3  ;;  %v27_v6 = vld [vmem:[%s4288_s0 + $0x30] sm:$0xff]  ;;  %v28_v7 = vld [vmem:[%s4288_s0 + $0x38] sm:$0xff]  ;;  %v3263_v8 = vmax.f32 %v21_v2, %v22_v5  ;;  %vm1070_vm4 = vcmask 1041408   ;;  %s3108_s16 = smov 20  }
   0x4   :  { %157 = vst.msk [vmem:[#allocation2 + $0x98] sm:$0x3] %vm151_vm1, %v3102_v3  ;;  %159 = vst.msk [vmem:[#allocation2 + $0x138] sm:$0x3] %vm151_vm1, %v3102_v3  ;;  %v23_v9 = vld [vmem:[%s4288_s0 + $0x10] sm:$0xff]  ;;  %v24_v10 = vld [vmem:[%s4288_s0 + $0x18] sm:$0xff]  ;;  %89 = vrot.lane.b32.xlu1 %v3236_v4, %s3103_s9  ;;  %v3273_v11 = vmax.f32 %v27_v6, %v28_v7 }
   0x5   :  { %162 = vst.msk [vmem:[#allocation2 + $0x10] sm:$0x1] %vm160_vm2, %v3102_v3  ;;  %163 = vst.msk [vmem:[#allocation2 + $0x20] sm:$0x1] %vm160_vm2, %v3102_v3  ;;  %85 = vrot.lane.b32.xlu0 %v3263_v8, %s3103_s9  ;;  %v3277_v12 = vmax.f32 %v23_v9, %v24_v10  ;;  %v31_v13 = vld [vmem:[%s4288_s0 + $0x50] sm:$0xff]  ;;  %v32_v14 = vld [vmem:[%s4288_s0 + $0x58] sm:$0xff] }
   0x6   :  { %164 = vst.msk [vmem:[#allocation2 + $0x30] sm:$0x1] %vm160_vm2, %v3102_v3  ;;  %165 = vst.msk [vmem:[#allocation2 + $0x40] sm:$0x1] %vm160_vm2, %v3102_v3  ;;  %v29_v15 = vld [vmem:[%s4288_s0 + $0x40] sm:$0xff]  ;;  %v30_v16 = vld [vmem:[%s4288_s0 + $0x48] sm:$0xff]  ;;  %v3293_v17 = vmax.f32 %v31_v13, %v32_v14 }
   0x7   :  { %166 = vst.msk [vmem:[#allocation2 + $0x50] sm:$0x1] %vm160_vm2, %v3102_v3  ;;  %167 = vst.msk [vmem:[#allocation2 + $0x60] sm:$0x1] %vm160_vm2, %v3102_v3  ;;  %v3297_v18 = vmax.f32 %v29_v15, %v30_v16  ;;  %v35_v19 = vld [vmem:[%s4288_s0 + $0x70] sm:$0xff]  ;;  %v36_v20 = vld [vmem:[%s4288_s0 + $0x78] sm:$0xff] }
   0x8   :  { %168 = vst.msk [vmem:[#allocation2 + $0x70] sm:$0x1] %vm160_vm2, %v3102_v3  ;;  %169 = vst.msk [vmem:[#allocation2 + $0x80] sm:$0x1] %vm160_vm2, %v3102_v3  ;;  %91 = vrot.lane.b32.xlu1 %v3273_v11, %s3103_s9  ;;  %v33_v21 = vld [vmem:[%s4288_s0 + $0x60] sm:$0xff]  ;;  %v34_v22 = vld [vmem:[%s4288_s0 + $0x68] sm:$0xff]  ;;  %v3313_v23 = vmax.f32 %v35_v19, %v36_v20 }
   0x9   :  { %172 = vst.msk [vmem:[#allocation2 + $0xb0] sm:$0x1] %vm160_vm2, %v3102_v3  ;;  %173 = vst.msk [vmem:[#allocation2 + $0xc0] sm:$0x1] %vm160_vm2, %v3102_v3  ;;  %87 = vrot.lane.b32.xlu0 %v3277_v12, %s3103_s9  ;;  %v3317_v24 = vmax.f32 %v33_v21, %v34_v22  ;;  %v39_v25 = vld [vmem:[%s4288_s0 + $0x90] sm:$0xff]  ;;  %v40_v26 = vld [vmem:[%s4288_s0 + $0x98] sm:$0xff] }
   0xa   :  { %174 = vst.msk [vmem:[#allocation2 + $0xd0] sm:$0x1] %vm160_vm2, %v3102_v3  ;;  %175 = vst.msk [vmem:[#allocation2 + $0xe0] sm:$0x1] %vm160_vm2, %v3102_v3  ;;  %v37_v27 = vld [vmem:[%s4288_s0 + $0x80] sm:$0xff]  ;;  %v38_v28 = vld [vmem:[%s4288_s0 + $0x88] sm:$0xff]  ;;  %v3333_v29 = vmax.f32 %v39_v25, %v40_v26 }
   0xb   :  { %176 = vst.msk [vmem:[#allocation2 + $0xf0] sm:$0x1] %vm160_vm2, %v3102_v3  ;;  %177 = vst.msk [vmem:[#allocation2 + $0x100] sm:$0x1] %vm160_vm2, %v3102_v3  ;;  %v3337_v30 = vmax.f32 %v37_v27, %v38_v28  ;;  %v43_v31 = vld [vmem:[%s4288_s0 + $0xb0] sm:$0xff]  ;;  %v44_v32 = vld [vmem:[%s4288_s0 + $0xb8] sm:$0xff] }
   0xc   :  { %178 = vst.msk [vmem:[#allocation2 + $0x110] sm:$0x1] %vm160_vm2, %v3102_v3  ;;  %179 = vst.msk [vmem:[#allocation2 + $0x120] sm:$0x1] %vm160_vm2, %v3102_v3  ;;  %95 = vrot.lane.b32.xlu1 %v3293_v17, %s3103_s9  ;;  %v41_v33 = vld [vmem:[%s4288_s0 + $0xa0] sm:$0xff]  ;;  %v42_v34 = vld [vmem:[%s4288_s0 + $0xa8] sm:$0xff]  ;;  %v3353_v35 = vmax.f32 %v43_v31, %v44_v32 }
   0xd   :  { %182 = vst.msk [vmem:[#allocation2 + $0x19] sm:$0x1] %vm160_vm2, %v3102_v3  ;;  %183 = vst.msk [vmem:[#allocation2 + $0x29] sm:$0x1] %vm160_vm2, %v3102_v3  ;;  %93 = vrot.lane.b32.xlu0 %v3297_v18, %s3103_s9  ;;  %v3357_v36 = vmax.f32 %v41_v33, %v42_v34  ;;  %v47_v37 = vld [vmem:[%s4288_s0 + $0xd0] sm:$0xff]  ;;  %v48_v38 = vld [vmem:[%s4288_s0 + $0xd8] sm:$0xff] }
   0xe   :  { %184 = vst.msk [vmem:[#allocation2 + $0x39] sm:$0x1] %vm160_vm2, %v3102_v3  ;;  %185 = vst.msk [vmem:[#allocation2 + $0x49] sm:$0x1] %vm160_vm2, %v3102_v3  ;;  %v45_v39 = vld [vmem:[%s4288_s0 + $0xc0] sm:$0xff]  ;;  %v46_v40 = vld [vmem:[%s4288_s0 + $0xc8] sm:$0xff]  ;;  %v3373_v41 = vmax.f32 %v47_v37, %v48_v38 }
   0xf   :  { %186 = vst.msk [vmem:[#allocation2 + $0x59] sm:$0x1] %vm160_vm2, %v3102_v3  ;;  %187 = vst.msk [vmem:[#allocation2 + $0x69] sm:$0x1] %vm160_vm2, %v3102_v3  ;;  %v3377_v42 = vmax.f32 %v45_v39, %v46_v40  ;;  %v51_v43 = vld [vmem:[%s4288_s0 + $0xf0] sm:$0xff]  ;;  %v52_v44 = vld [vmem:[%s4288_s0 + $0xf8] sm:$0xff] }
  0x10   :  { %188 = vst.msk [vmem:[#allocation2 + $0x79] sm:$0x1] %vm160_vm2, %v3102_v3  ;;  %189 = vst.msk [vmem:[#allocation2 + $0x89] sm:$0x1] %vm160_vm2, %v3102_v3  ;;  %99 = vrot.lane.b32.xlu1 %v3313_v23, %s3103_s9  ;;  %v49_v45 = vld [vmem:[%s4288_s0 + $0xe0] sm:$0xff]  ;;  %v50_v46 = vld [vmem:[%s4288_s0 + $0xe8] sm:$0xff]  ;;  %v3393_v47 = vmax.f32 %v51_v43, %v52_v44 }
  0x11   :  { %192 = vst.msk [vmem:[#allocation2 + $0xb9] sm:$0x1] %vm160_vm2, %v3102_v3  ;;  %193 = vst.msk [vmem:[#allocation2 + $0xc9] sm:$0x1] %vm160_vm2, %v3102_v3  ;;  %97 = vrot.lane.b32.xlu0 %v3317_v24, %s3103_s9  ;;  %v3397_v48 = vmax.f32 %v49_v45, %v50_v46  ;;  %v234_v59 = vld [vmem:[#allocation2 + $0x1] sm:$0xff]  ;;  %s3104_s0 = smov 4  }
  0x12   :  { %194 = vst.msk [vmem:[#allocation2 + $0xd9] sm:$0x1] %vm160_vm2, %v3102_v3  ;;  %195 = vst.msk [vmem:[#allocation2 + $0xe9] sm:$0x1] %vm160_vm2, %v3102_v3  ;;  %s3109_s19 = smov 24   ;;  %s3110_s20 = smov 28  }
  0x13   :  { %196 = vst.msk [vmem:[#allocation2 + $0xf9] sm:$0x1] %vm160_vm2, %v3102_v3  ;;  %197 = vst.msk [vmem:[#allocation2 + $0x109] sm:$0x1] %vm160_vm2, %v3102_v3  ;;  %vm908_vm5 = vcmask 97280   ;;  %vm925_vm6 = vcmask 130048  }
  0x14   :  { %198 = vst.msk [vmem:[#allocation2 + $0x119] sm:$0x1] %vm160_vm2, %v3102_v3  ;;  %199 = vst.msk [vmem:[#allocation2 + $0x129] sm:$0x1] %vm160_vm2, %v3102_v3  ;;  %103 = vrot.lane.b32.xlu1 %v3333_v29, %s3103_s9  ;;  %vm942_vm7 = vcmask 162816   ;;  %vm959_vm8 = vcmask 195584  }
  0x15   :  { %161 = vst.msk [vmem:[#allocation2] sm:$0x1] %vm160_vm2, %v3102_v3  ;;  %181 = vst.msk [vmem:[#allocation2 + $0x9] sm:$0x1] %vm160_vm2, %v3102_v3  ;;  %101 = vrot.lane.b32.xlu0 %v3337_v30, %s3103_s9  ;;  %vm976_vm9 = vcmask 228352   ;;  %vm993_vm10 = vcmask 261120  }
  0x16   :  { %170 = vst.msk [vmem:[#allocation2 + $0x90] sm:$0x1] %vm160_vm2, %v3102_v3  ;;  %171 = vst.msk [vmem:[#allocation2 + $0xa0] sm:$0x1] %vm160_vm2, %v3102_v3  ;;  %vm1045_vm11 = vcmask 293888   ;;  %vm1197_vm12 = vcmask 57344  }
  0x17   :  { %180 = vst.msk [vmem:[#allocation2 + $0x130] sm:$0x1] %vm160_vm2, %v3102_v3  ;;  %190 = vst.msk [vmem:[#allocation2 + $0x99] sm:$0x1] %vm160_vm2, %v3102_v3  ;;  %vm1188_vm13 = vcmask 58368   ;;  %s3113_s23 = smov 40  }
  0x18   :  { %191 = vst.msk [vmem:[#allocation2 + $0xa9] sm:$0x1] %vm160_vm2, %v3102_v3  ;;  %200 = vst.msk [vmem:[#allocation2 + $0x139] sm:$0x1] %vm160_vm2, %v3102_v3  ;;  %107 = vrot.lane.b32.xlu1 %v3353_v35, %s3103_s9  ;;  %s3114_s24 = smov 64   ;;  %s3115_s25 = smov 56  }
  0x19   :  { %105 = vrot.lane.b32.xlu0 %v3357_v36, %s3103_s9  ;;  %1187 = vst.msk [vmem:[#allocation3] sm:$0xff] %vm891_vm3, %v3102_v3  ;;  %1190 = vst.msk [vmem:[#allocation3 + $0xa0] sm:$0xff] %vm891_vm3, %v3102_v3  ;;  %v3099_v33 = vld [vmem:[%s4289_s1 + $0x10] ss:$0 sps:$4 sm:$0x33]   ;;  %vm1976_vm14 = vcmask 326656  }
  0x1a   :  { %1193 = vst.msk [vmem:[#allocation3 + $0x90] sm:$0xff] %vm891_vm3, %v3102_v3  ;;  %1195 = vst.msk [vmem:[#allocation3 + $0x130] sm:$0xff] %vm891_vm3, %v3102_v3  ;;  %2439 = vmatprep.subr.msk.bf16.mxu0 %vm1070_vm4, %v3099_v33  ;;  %vm1993_vm15 = vcmask 392192   ;;  %vm2010_vm1 = vcmask 457728   ;;  %vm2027_vm2 = vcmask 523264  }
  0x1b   :  { %1205 = vst.msk [vmem:[#allocation3 + $0x70] sm:$0x1] %vm1197_vm12, %v3102_v3  ;;  %1206 = vst.msk [vmem:[#allocation3 + $0x80] sm:$0x1] %vm1197_vm12, %v3102_v3 }
  0x1c   :  { %111 = vrot.lane.b32.xlu1 %v3373_v41, %s3103_s9  ;;  %v250_v1 = vld [vmem:[#allocation2 + $0x2] sm:$0xff]  ;;  %1198 = vst.msk [vmem:[#allocation3] sm:$0x1] %vm1197_vm12, %v3102_v3  ;;  %1199 = vst.msk [vmem:[#allocation3 + $0x10] sm:$0x1] %vm1197_vm12, %v3102_v3 }
  0x1d   :  { %109 = vrot.lane.b32.xlu0 %v3377_v42, %s3103_s9  ;;  %1200 = vst.msk [vmem:[#allocation3 + $0x20] sm:$0x1] %vm1197_vm12, %v3102_v3  ;;  %1201 = vst.msk [vmem:[#allocation3 + $0x30] sm:$0x1] %vm1197_vm12, %v3102_v3 }
  0x1e   :  { %1202 = vst.msk [vmem:[#allocation3 + $0x40] sm:$0x1] %vm1197_vm12, %v3102_v3  ;;  %1203 = vst.msk [vmem:[#allocation3 + $0x50] sm:$0x1] %vm1197_vm12, %v3102_v3 }
  0x1f   :  { %1204 = vst.msk [vmem:[#allocation3 + $0x60] sm:$0x1] %vm1197_vm12, %v3102_v3  ;;  %1207 = vst.msk [vmem:[#allocation3 + $0x90] sm:$0x1] %vm1197_vm12, %v3102_v3 }
  0x20   :  { %115 = vrot.lane.b32.xlu1 %v3393_v47, %s3103_s9  ;;  %1208 = vst.msk [vmem:[#allocation3 + $0xa0] sm:$0x1] %vm1197_vm12, %v3102_v3  ;;  %1209 = vst.msk [vmem:[#allocation3 + $0xb0] sm:$0x1] %vm1197_vm12, %v3102_v3 }
  0x21   :  { %113 = vrot.lane.b32.xlu0 %v3397_v48, %s3103_s9  ;;  %s3105_s9 = smov 8   ;;  %1210 = vst.msk [vmem:[#allocation3 + $0xc0] sm:$0x1] %vm1197_vm12, %v3102_v3  ;;  %1211 = vst.msk [vmem:[#allocation3 + $0xd0] sm:$0x1] %vm1197_vm12, %v3102_v3 }
  0x22   :  { %1212 = vst.msk [vmem:[#allocation3 + $0xe0] sm:$0x1] %vm1197_vm12, %v3102_v3  ;;  %1213 = vst.msk [vmem:[#allocation3 + $0xf0] sm:$0x1] %vm1197_vm12, %v3102_v3 }
  0x23   :  { %1214 = vst.msk [vmem:[#allocation3 + $0x100] sm:$0x1] %vm1197_vm12, %v3102_v3  ;;  %1215 = vst.msk [vmem:[#allocation3 + $0x110] sm:$0x1] %vm1197_vm12, %v3102_v3 }
  0x24   :  { %1216 = vst.msk [vmem:[#allocation3 + $0x120] sm:$0x1] %vm1197_vm12, %v3102_v3  ;;  %1217 = vst.msk [vmem:[#allocation3 + $0x130] sm:$0x1] %vm1197_vm12, %v3102_v3 }
  0x25   :  { %1219 = vst.msk [vmem:[#allocation3 + $0x19] sm:$0x1] %vm1197_vm12, %v3102_v3  ;;  %1220 = vst.msk [vmem:[#allocation3 + $0x29] sm:$0x1] %vm1197_vm12, %v3102_v3 }
  0x26   :  { %1221 = vst.msk [vmem:[#allocation3 + $0x39] sm:$0x1] %vm1197_vm12, %v3102_v3  ;;  %1222 = vst.msk [vmem:[#allocation3 + $0x49] sm:$0x1] %vm1197_vm12, %v3102_v3 }
  0x27   :  { %1223 = vst.msk [vmem:[#allocation3 + $0x59] sm:$0x1] %vm1197_vm12, %v3102_v3  ;;  %1224 = vst.msk [vmem:[#allocation3 + $0x69] sm:$0x1] %vm1197_vm12, %v3102_v3 }
  0x28   :  { %1225 = vst.msk [vmem:[#allocation3 + $0x79] sm:$0x1] %vm1197_vm12, %v3102_v3  ;;  %1226 = vst.msk [vmem:[#allocation3 + $0x89] sm:$0x1] %vm1197_vm12, %v3102_v3 }
  0x29   :  { %1229 = vst.msk [vmem:[#allocation3 + $0xb9] sm:$0x1] %vm1197_vm12, %v3102_v3  ;;  %1230 = vst.msk [vmem:[#allocation3 + $0xc9] sm:$0x1] %vm1197_vm12, %v3102_v3 }
  0x2a   :  { %1231 = vst.msk [vmem:[#allocation3 + $0xd9] sm:$0x1] %vm1197_vm12, %v3102_v3  ;;  %1232 = vst.msk [vmem:[#allocation3 + $0xe9] sm:$0x1] %vm1197_vm12, %v3102_v3 }
  0x2b   :  { %1233 = vst.msk [vmem:[#allocation3 + $0xf9] sm:$0x1] %vm1197_vm12, %v3102_v3  ;;  %1234 = vst.msk [vmem:[#allocation3 + $0x109] sm:$0x1] %vm1197_vm12, %v3102_v3 }
  0x2c   :  { %1235 = vst.msk [vmem:[#allocation3 + $0x119] sm:$0x1] %vm1197_vm12, %v3102_v3  ;;  %1236 = vst.msk [vmem:[#allocation3 + $0x129] sm:$0x1] %vm1197_vm12, %v3102_v3 }
  0x2d   :  { %1191 = vst.msk [vmem:[#allocation3 + $0xa8] sm:$0x3] %vm1188_vm13, %v3102_v3  ;;  %1189 = vst.msk [vmem:[#allocation3 + $0x8] sm:$0x3] %vm1188_vm13, %v3102_v3 }
  0x2e   :  { %1194 = vst.msk [vmem:[#allocation3 + $0x98] sm:$0x3] %vm1188_vm13, %v3102_v3  ;;  %1196 = vst.msk [vmem:[#allocation3 + $0x138] sm:$0x3] %vm1188_vm13, %v3102_v3 }
  0x2f   :  { %1228 = vst.msk [vmem:[#allocation3 + $0xa9] sm:$0x1] %vm1197_vm12, %v3102_v3  ;;  %1218 = vst.msk [vmem:[#allocation3 + $0x9] sm:$0x1] %vm1197_vm12, %v3102_v3 }
  0x30   :  { %1227 = vst.msk [vmem:[#allocation3 + $0x99] sm:$0x1] %vm1197_vm12, %v3102_v3  ;;  %1237 = vst.msk [vmem:[#allocation3 + $0x139] sm:$0x1] %vm1197_vm12, %v3102_v3 }
  0x76   :  { %v90_v49 = vpop.permute.xlu1 %89 }
  0x77   :  { %v135_v50 = vmax.f32 %v3236_v4, %v90_v49  ;;  %v86_v51 = vpop.permute.xlu0 %85 }
  0x78   :  { %v133_v52 = vmax.f32 %v3263_v8, %v86_v51 }
  0x79   :  { %204 = vst.msk [vmem:[#allocation2 + $0x31] sm:$0xff] %vm149_vm0, %v135_v50 }
  0x7a   :  { %202 = vst.msk [vmem:[#allocation2 + $0x11] sm:$0xff] %vm149_vm0, %v133_v52  ;;  %v92_v53 = vpop.permute.xlu1 %91 }
  0x7b   :  { %v136_v54 = vmax.f32 %v3273_v11, %v92_v53  ;;  %v88_v55 = vpop.permute.xlu0 %87 }
  0x7c   :  { %v134_v56 = vmax.f32 %v3277_v12, %v88_v55 }
  0x7d   :  { %205 = vst.msk [vmem:[#allocation2 + $0x41] sm:$0xff] %vm149_vm0, %v136_v54 }
  0x7e   :  { %203 = vst.msk [vmem:[#allocation2 + $0x21] sm:$0xff] %vm149_vm0, %v134_v56  ;;  %v96_v57 = vpop.permute.xlu1 %95 }
  0x7f   :  { %v94_v58 = vpop.permute.xlu0 %93  ;;  %v138_v60 = vmax.f32 %v3293_v17, %v96_v57 }
  0x80   :  { %v137_v61 = vmax.f32 %v3297_v18, %v94_v58  ;;  %v3425_v4 = vld [vmem:[#allocation2 + $0x31] sm:$0xff] }
  0x81   :  { %v235_v62 = vld [vmem:[#allocation2 + $0x11] sm:$0xff]  ;;  %207 = vst.msk [vmem:[#allocation2 + $0x61] sm:$0xff] %vm149_vm0, %v138_v60 }
  0x82   :  { %206 = vst.msk [vmem:[#allocation2 + $0x51] sm:$0xff] %vm149_vm0, %v137_v61  ;;  %v2458_v63 = vpack.i.bf16 %v235_v62, %v234_v59  ;;  %v100_v0 = vpop.permute.xlu1 %99  ;;  %v3423_v2 = vld [vmem:[#allocation2 + $0x12] sm:$0xff] }
  0x83   :  { %v140_v5 = vmax.f32 %v3313_v23, %v100_v0  ;;  %v98_v6 = vpop.permute.xlu0 %97  ;;  %v2468_v9 = vpack.i.bf16 %v3423_v2, %v250_v1  ;;  %v253_v14 = vld [vmem:[#allocation2 + $0x32] sm:$0xff] }
  0x84   :  { %2459 = vrot.lane.b32.xlu0 %v2458_v63, %s3104_s0  ;;  %v139_v7 = vmax.f32 %v3317_v24, %v98_v6  ;;  %v3443_v18 = vld [vmem:[#allocation2 + $0x10] sm:$0xff]  ;;  %v3451_v23 = vld [vmem:[#allocation2 + $0x40] sm:$0xff] }
  0x85   :  { %v236_v8 = vld [vmem:[#allocation2 + $0x21] sm:$0xff]  ;;  %209 = vst.msk [vmem:[#allocation2 + $0x81] sm:$0xff] %vm149_vm0, %v140_v5  ;;  %v3449_v22 = vld [vmem:[#allocation2 + $0x30] sm:$0xff] }
  0x86   :  { %v3433_v10 = vpack.i.bf16 %v3425_v4, %v236_v8  ;;  %208 = vst.msk [vmem:[#allocation2 + $0x71] sm:$0xff] %vm149_vm0, %v139_v7  ;;  %v104_v11 = vpop.permute.xlu1 %103  ;;  %v3436_v12 = vld [vmem:[#allocation2 + $0x20] sm:$0xff]  ;;  %v2488_v27 = vpack.i.bf16 %v236_v8, %v235_v62  ;;  %v2483_v28 = vpack.i.bf16 %v3451_v23, %v3449_v22  ;;  %v322_v8 = vld [vmem:[#allocation2 + $0x90] sm:$0xff] }
  0x87   :  { %v252_v13 = vld [vmem:[#allocation2 + $0x22] sm:$0xff]  ;;  %v142_v15 = vmax.f32 %v3333_v29, %v104_v11  ;;  %v102_v16 = vpop.permute.xlu0 %101  ;;  %v2478_v19 = vpack.i.bf16 %v3436_v12, %v3443_v18  ;;  %v2508_v44 = vpack.i.bf16 %v3449_v22, %v3436_v12 }
  0x88   :  { %2469 = vrot.lane.b32.xlu0 %v2468_v9, %s3105_s9  ;;  %2464 = vrot.lane.b32.xlu1 %v3433_v10, %s3104_s0  ;;  %v141_v17 = vmax.f32 %v3337_v30, %v102_v16  ;;  %v2473_v20 = vpack.i.bf16 %v253_v14, %v252_v13  ;;  %v285_v30 = vld [vmem:[#allocation2 + $0x41] sm:$0xff] }
  0x89   :  { %211 = vst.msk [vmem:[#allocation2 + $0xc1] sm:$0xff] %vm149_vm0, %v142_v15  ;;  %v2493_v37 = vpack.i.bf16 %v285_v30, %v3425_v4  ;;  %v301_v39 = vld [vmem:[#allocation2 + $0x42] sm:$0xff]  ;;  %v3483_v46 = vld [vmem:[#allocation2 + $0x50] sm:$0xff] }
  0x8a   :  { %210 = vst.msk [vmem:[#allocation2 + $0xb1] sm:$0xff] %vm149_vm0, %v141_v17  ;;  %v108_v21 = vpop.permute.xlu1 %107  ;;  %v2503_v45 = vpack.i.bf16 %v301_v39, %v253_v14  ;;  %v334_v49 = vld [vmem:[#allocation2 + $0x51] sm:$0xff]  ;;  %v240_v54 = vld [vmem:[#allocation2 + $0x61] sm:$0xff] }
  0x8b   :  { %v144_v24 = vmax.f32 %v3353_v35, %v108_v21  ;;  %v106_v25 = vpop.permute.xlu0 %105  ;;  %v1072_v35 = vsel %vm1070_vm4, %v3099_v33, 0  ;;  %v2523_v50 = vpack.i.bf16 %v334_v49, %v285_v30  ;;  %v350_v51 = vld [vmem:[#allocation2 + $0x52] sm:$0xff]  ;;  %v3499_v56 = vld [vmem:[#allocation2 + $0x60] sm:$0xff]  ;;  %v2568_v63 = vpack.i.bf16 %v240_v54, %v334_v49 }
  0x8c   :  { %2479 = vrot.lane.b32.xlu0 %v2478_v19, %s3106_s10  ;;  %2474 = vrot.lane.b32.xlu1 %v2473_v20, %s3105_s9  ;;  %v143_v26 = vmax.f32 %v3357_v36, %v106_v25  ;;  %v2498_v36 = vpack.i.bf16 %v252_v13, %v3423_v2  ;;  %v2538_v53 = vpack.i.bf16 %v350_v51, %v301_v39  ;;  %v256_v58 = vld [vmem:[#allocation2 + $0x62] sm:$0xff]  ;;  %v354_v15 = vld [vmem:[#allocation2 + $0x92] sm:$0xff]  ;;  %vm2059_vm4 = vcmask 588800  }
  0x8d   :  { %213 = vst.msk [vmem:[#allocation2 + $0xe1] sm:$0xff] %vm149_vm0, %v144_v24  ;;  %2398 = vmatpush3.bf16.msra.mxu0 %v1072_v35  ;;  %v241_v52 = vld [vmem:[#allocation2 + $0x71] sm:$0xff]  ;;  %v2558_v59 = vpack.i.bf16 %v3499_v56, %v3483_v46  ;;  %v273_v62 = vld [vmem:[#allocation2 + $0x80] sm:$0xff]  ;;  %v2578_v2 = vpack.i.bf16 %v256_v58, %v350_v51 }
  0x8e   :  { %212 = vst.msk [vmem:[#allocation2 + $0xd1] sm:$0xff] %vm149_vm0, %v143_v26  ;;  %v112_v29 = vpop.permute.xlu1 %111  ;;  %v2543_v55 = vpack.i.bf16 %v241_v52, %v240_v54  ;;  %v257_v57 = vld [vmem:[#allocation2 + $0x72] sm:$0xff]  ;;  %v289_v1 = vld [vmem:[#allocation2 + $0x81] sm:$0xff]  ;;  %v2593_v9 = vpack.i.bf16 %v322_v8, %v273_v62 }
  0x8f   :  { %v110_v31 = vpop.permute.xlu0 %109  ;;  %v146_v32 = vmax.f32 %v3373_v41, %v112_v29  ;;  %v2553_v60 = vpack.i.bf16 %v257_v57, %v256_v58  ;;  %v3505_v61 = vld [vmem:[#allocation2 + $0x70] sm:$0xff]  ;;  %v2573_v4 = vpack.i.bf16 %v289_v1, %v241_v52  ;;  %v305_v5 = vld [vmem:[#allocation2 + $0x82] sm:$0xff] }
  0x90   :  { %2489 = vrot.lane.b32.xlu0 %v2488_v27, %s3107_s13  ;;  %2484 = vrot.lane.b32.xlu1 %v2483_v28, %s3106_s10  ;;  %v145_v34 = vmax.f32 %v3377_v42, %v110_v31  ;;  %v3100_v42 = vld [vmem:[%s4289_s1 + $0x8] sm:$0xff]   ;;  %v2563_v0 = vpack.i.bf16 %v273_v62, %v3505_v61  ;;  %v2588_v6 = vpack.i.bf16 %v3505_v61, %v3499_v56  ;;  %v3526_v28 = vld [vmem:[#allocation2 + $0xc0] sm:$0xff]  ;;  %v330_v8 = vld [vmem:[#allocation2 + $0x130] sm:$0xff] }
  0x91   :  { %215 = vst.msk [vmem:[#allocation2 + $0x101] sm:$0xff] %vm149_vm0, %v146_v32  ;;  %2399 = vmatprep.subr.bf16.mxu0 %v3100_v42  ;;  %v2583_v7 = vpack.i.bf16 %v305_v5, %v257_v57  ;;  %v242_v11 = vld [vmem:[#allocation2 + $0xa1] sm:$0xff]  ;;  %v243_v13 = vld [vmem:[#allocation2 + $0xb1] sm:$0xff]  ;;  %v2618_v19 = vpack.i.bf16 %v354_v15, %v305_v5 }
  0x92   :  { %214 = vst.msk [vmem:[#allocation2 + $0xf1] sm:$0xff] %vm149_vm0, %v145_v34  ;;  %v116_v38 = vpop.permute.xlu1 %115  ;;  %2400 = vmatpush3.bf16.msra.mxu0 %v3100_v42  ;;  %v2613_v16 = vpack.i.bf16 %v243_v13, %v242_v11  ;;  %v259_v21 = vld [vmem:[#allocation2 + $0xb2] sm:$0xff]  ;;  %v244_v24 = vld [vmem:[#allocation2 + $0xc1] sm:$0xff] }
  0x93   :  { %v148_v40 = vmax.f32 %v3393_v47, %v116_v38  ;;  %v114_v41 = vpop.permute.xlu0 %113  ;;  %v3101_v47 = vld [vmem:[%s4289_s1] sm:$0xff]   ;;  %s3111_s1 = smov 32   ;;  %v3524_v27 = vld [vmem:[#allocation2 + $0xb0] sm:$0xff]  ;;  %v2648_v35 = vpack.i.bf16 %v244_v24, %v243_v13 }
  0x94   :  { %2499 = vrot.lane.b32.xlu0 %v2498_v36, %s3108_s16  ;;  %2494 = vrot.lane.b32.xlu1 %v2493_v37, %s3107_s13  ;;  %v147_v43 = vmax.f32 %v3397_v48, %v114_v41  ;;  %v2513_v48 = vpack.i.bf16 %v3483_v46, %v3451_v23  ;;  %v260_v30 = vld [vmem:[#allocation2 + $0xc2] sm:$0xff]  ;;  %v2638_v31 = vpack.i.bf16 %v3526_v28, %v3524_v27  ;;  %v346_v13 = vld [vmem:[#allocation2 + $0x131] sm:$0xff] }
  0x95   :  { %217 = vst.msk [vmem:[#allocation2 + $0x121] sm:$0xff] %vm149_vm0, %v148_v40  ;;  %2401 = vmatprep.subr.bf16.mxu0 %v3101_v47  ;;  %v245_v17 = vld [vmem:[#allocation2 + $0xd1] sm:$0xff]  ;;  %v3534_v34 = vld [vmem:[#allocation2 + $0xe0] sm:$0xff]  ;;  %v2658_v38 = vpack.i.bf16 %v260_v30, %v259_v21 }
  0x96   :  { %216 = vst.msk [vmem:[#allocation2 + $0x111] sm:$0xff] %vm149_vm0, %v147_v43  ;;  %2402 = vmatpush3.bf16.msra.mxu0 %v3101_v47  ;;  %v2623_v25 = vpack.i.bf16 %v245_v17, %v244_v24  ;;  %v261_v29 = vld [vmem:[#allocation2 + $0xd2] sm:$0xff]  ;;  %v293_v37 = vld [vmem:[#allocation2 + $0xe1] sm:$0xff] }
  0x97   :  { %v2633_v32 = vpack.i.bf16 %v261_v29, %v260_v30  ;;  %v3532_v33 = vld [vmem:[#allocation2 + $0xd0] sm:$0xff]  ;;  %v2653_v39 = vpack.i.bf16 %v293_v37, %v245_v17  ;;  %v309_v40 = vld [vmem:[#allocation2 + $0xe2] sm:$0xff] }
  0x98   :  { %2509 = vrot.lane.b32.xlu0 %v2508_v44, %s3109_s19  ;;  %2504 = vrot.lane.b32.xlu1 %v2503_v45, %s3108_s16  ;;  %v2643_v36 = vpack.i.bf16 %v3534_v34, %v3532_v33  ;;  %v2668_v41 = vpack.i.bf16 %v3532_v33, %v3526_v28  ;;  %v2663_v42 = vpack.i.bf16 %v309_v40, %v261_v29  ;;  %v248_v51 = vld [vmem:[#allocation2 + $0x101] sm:$0xff]  ;;  %v362_v17 = vld [vmem:[#allocation2 + $0x132] sm:$0xff] }
  0x99   :  { %v3546_v43 = vld [vmem:[#allocation2 + $0xf0] sm:$0xff]  ;;  %v218_v30 = vld [vmem:[#allocation2] sm:$0xff] }
  0x9a   :  { %v2673_v44 = vpack.i.bf16 %v3546_v43, %v3534_v34  ;;  %v342_v45 = vld [vmem:[#allocation2 + $0xf1] sm:$0xff] }
  0x9b   :  { %v2683_v47 = vpack.i.bf16 %v342_v45, %v293_v37  ;;  %v2728_v62 = vpack.i.bf16 %v248_v51, %v342_v45 }
  0x9c   :  { %2519 = vrot.lane.b32.xlu0 %v3433_v10, %s3110_s20  ;;  %2514 = vrot.lane.b32.xlu1 %v2513_v48, %s3109_s19  ;;  %v338_v10 = vld [vmem:[#allocation2 + $0x91] sm:$0xff] }
  0x9d   :  { %v2603_v14 = vpack.i.bf16 %v338_v10, %v289_v1  ;;  %v358_v48 = vld [vmem:[#allocation2 + $0xf2] sm:$0xff] }
  0x9e   :  { %v249_v49 = vld [vmem:[#allocation2 + $0x111] sm:$0xff] }
  0x9f   :  { %v2703_v52 = vpack.i.bf16 %v249_v49, %v248_v51  ;;  %v265_v54 = vld [vmem:[#allocation2 + $0x112] sm:$0xff] }
  0xa0   :  { %2529 = vrot.lane.b32.xlu0 %v2473_v20, %s3111_s1  ;;  %2524 = vrot.lane.b32.xlu1 %v2523_v50, %s3110_s20  ;;  %v258_v20 = vld [vmem:[#allocation2 + $0xa2] sm:$0xff] }
  0xa1   :  { %v2628_v26 = vpack.i.bf16 %v259_v21, %v258_v20 }
  0xa4   :  { %2539 = vrot.lane.b32.xlu0 %v2538_v53, %s3111_s1  ;;  %2534 = vrot.lane.b32.xlu1 %v2523_v50, %s3104_s0  ;;  %v2698_v50 = vpack.i.bf16 %v358_v48, %v309_v40 }
  0xa8   :  { %2549 = vrot.lane.b32.xlu0 %v2538_v53, %s3105_s9  ;;  %2544 = vrot.lane.b32.xlu1 %v2543_v55, %s3104_s0  ;;  %v3558_v53 = vld [vmem:[#allocation2 + $0x100] sm:$0xff] }
  0xa9   :  { %v2718_v57 = vpack.i.bf16 %v3558_v53, %v3546_v43 }
  0xac   :  { %2559 = vrot.lane.b32.xlu0 %v2558_v59, %s3106_s10  ;;  %2554 = vrot.lane.b32.xlu1 %v2553_v60, %s3105_s9  ;;  %v3564_v59 = vld [vmem:[#allocation2 + $0x110] sm:$0xff] }
  0xb0   :  { %2569 = vrot.lane.b32.xlu0 %v2568_v63, %s3107_s13  ;;  %2564 = vrot.lane.b32.xlu1 %v2563_v0, %s3106_s10  ;;  %v297_v0 = vld [vmem:[#allocation2 + $0x121] sm:$0xff] }
  0xb4   :  { %2579 = vrot.lane.b32.xlu0 %v2578_v2, %s3108_s16  ;;  %2574 = vrot.lane.b32.xlu1 %v2573_v4, %s3107_s13  ;;  %v2733_v2 = vpack.i.bf16 %v297_v0, %v249_v49  ;;  %v313_v4 = vld [vmem:[#allocation2 + $0x122] sm:$0xff] }
  0xb5   :  { %v2773_v21 = vpack.i.bf16 %v362_v17, %v313_v4 }
  0xb8   :  { %2589 = vrot.lane.b32.xlu0 %v2588_v6, %s3109_s19  ;;  %2584 = vrot.lane.b32.xlu1 %v2583_v7, %s3108_s16  ;;  %v2748_v6 = vpack.i.bf16 %v3564_v59, %v3558_v53  ;;  %v2743_v7 = vpack.i.bf16 %v313_v4, %v265_v54 }
  0xbc   :  { %2599 = vrot.lane.b32.xlu0 %v2543_v55, %s3110_s20  ;;  %2594 = vrot.lane.b32.xlu1 %v2593_v9, %s3109_s19  ;;  %v264_v55 = vld [vmem:[#allocation2 + $0x102] sm:$0xff] }
  0xbd   :  { %v2713_v58 = vpack.i.bf16 %v265_v54, %v264_v55  ;;  %v2738_v1 = vpack.i.bf16 %v264_v55, %v358_v48 }
  0xc0   :  { %2609 = vrot.lane.b32.xlu0 %v2553_v60, %s3111_s1  ;;  %2604 = vrot.lane.b32.xlu1 %v2603_v14, %s3110_s20  ;;  %v281_v60 = vld [vmem:[#allocation2 + $0x120] sm:$0xff] }
  0xc1   :  { %v2723_v63 = vpack.i.bf16 %v281_v60, %v3564_v59  ;;  %v2753_v11 = vpack.i.bf16 %v330_v8, %v281_v60 }
  0xc4   :  { %2619 = vrot.lane.b32.xlu0 %v2618_v19, %s3111_s1  ;;  %2614 = vrot.lane.b32.xlu1 %v2613_v16, %s3104_s0  ;;  %v2763_v16 = vpack.i.bf16 %v346_v13, %v297_v0 }
  0xc8   :  { %2629 = vrot.lane.b32.xlu0 %v2628_v26, %s3105_s9  ;;  %2624 = vrot.lane.b32.xlu1 %v2623_v25, %s3104_s0 }
  0xcc   :  { %2639 = vrot.lane.b32.xlu0 %v2638_v31, %s3106_s10  ;;  %2634 = vrot.lane.b32.xlu1 %v2633_v32, %s3105_s9 }
  0xd0   :  { %2649 = vrot.lane.b32.xlu0 %v2648_v35, %s3107_s13  ;;  %2644 = vrot.lane.b32.xlu1 %v2643_v36, %s3106_s10 }
  0xd4   :  { %2659 = vrot.lane.b32.xlu0 %v2658_v38, %s3108_s16  ;;  %2654 = vrot.lane.b32.xlu1 %v2653_v39, %s3107_s13 }
  0xd8   :  { %2669 = vrot.lane.b32.xlu0 %v2668_v41, %s3109_s19  ;;  %2664 = vrot.lane.b32.xlu1 %v2663_v42, %s3108_s16 }
  0xdc   :  { %2679 = vrot.lane.b32.xlu0 %v2623_v25, %s3110_s20  ;;  %2674 = vrot.lane.b32.xlu1 %v2673_v44, %s3109_s19 }
  0xe0   :  { %2689 = vrot.lane.b32.xlu0 %v2633_v32, %s3111_s1  ;;  %2684 = vrot.lane.b32.xlu1 %v2683_v47, %s3110_s20 }
  0xe4   :  { %2699 = vrot.lane.b32.xlu0 %v2698_v50, %s3111_s1  ;;  %2694 = vrot.lane.b32.xlu1 %v2683_v47, %s3104_s0 }
  0xe8   :  { %2709 = vrot.lane.b32.xlu0 %v2698_v50, %s3105_s9  ;;  %2704 = vrot.lane.b32.xlu1 %v2703_v52, %s3104_s0 }
  0xec   :  { %2719 = vrot.lane.b32.xlu0 %v2718_v57, %s3106_s10  ;;  %2714 = vrot.lane.b32.xlu1 %v2713_v58, %s3105_s9 }
  0xf0   :  { %2729 = vrot.lane.b32.xlu0 %v2728_v62, %s3107_s13  ;;  %2724 = vrot.lane.b32.xlu1 %v2723_v63, %s3106_s10 }
  0xf4   :  { %2739 = vrot.lane.b32.xlu0 %v2738_v1, %s3108_s16  ;;  %2734 = vrot.lane.b32.xlu1 %v2733_v2, %s3107_s13 }
  0xf6   :  { %v2460_v5 = vpop.permute.xlu0 %2459 }
  0xf7   :  { %v2462_v24 = vunpack.i.h.bf16 %v2460_v5  ;;  %v2461_v25 = vunpack.i.l.bf16 %v2460_v5 }
  0xf8   :  { %2749 = vrot.lane.b32.xlu0 %v2748_v6, %s3109_s19  ;;  %2744 = vrot.lane.b32.xlu1 %v2743_v7, %s3108_s16 }
  0xf9   :  { %v876_v37 = vsel %vm149_vm0, %v3443_v18, %v2462_v24  ;;  %v875_v38 = vsel %vm149_vm0, %v218_v30, %v2461_v25 }
  0xfa   :  { %v2465_v9 = vpop.permute.xlu1 %2464  ;;  %v2470_v10 = vpop.permute.xlu0 %2469 }
  0xfb   :  { %v2467_v31 = vunpack.i.h.bf16 %v2465_v9  ;;  %v2466_v32 = vunpack.i.l.bf16 %v2465_v9  ;;  %v2472_v35 = vunpack.i.h.bf16 %v2470_v10  ;;  %v2471_v36 = vunpack.i.l.bf16 %v2470_v10 }
  0xfc   :  { %2759 = vrot.lane.b32.xlu0 %v2703_v52, %s3110_s20  ;;  %2754 = vrot.lane.b32.xlu1 %v2753_v11, %s3109_s19 }
  0xfd   :  { %v878_v49 = vsel %vm149_vm0, %v3449_v22, %v2467_v31  ;;  %v877_v50 = vsel %vm149_vm0, %v3436_v12, %v2466_v32  ;;  %v892_v18 = vsel %vm891_vm3, %v875_v38, %v2471_v36  ;;  %v893_v54 = vsel %vm891_vm3, %v876_v37, %v2472_v35 }
  0xfe   :  { %v2475_v14 = vpop.permute.xlu1 %2474  ;;  %v2480_v15 = vpop.permute.xlu0 %2479 }
  0xff   :  { %v2477_v39 = vunpack.i.h.bf16 %v2475_v14  ;;  %v2476_v40 = vunpack.i.l.bf16 %v2475_v14  ;;  %v2482_v44 = vunpack.i.h.bf16 %v2480_v15  ;;  %v2481_v45 = vunpack.i.l.bf16 %v2480_v15 }
 0x100   :  { %2769 = vrot.lane.b32.xlu0 %v2713_v58, %s3111_s1  ;;  %2764 = vrot.lane.b32.xlu1 %v2763_v16, %s3110_s20 }
 0x101   :  { %v894_v58 = vsel %vm891_vm3, %v877_v50, %v2476_v40  ;;  %v895_v60 = vsel %vm891_vm3, %v878_v49, %v2477_v39  ;;  %v909_v1 = vsel %vm908_vm5, %v892_v18, %v2481_v45  ;;  %v910_v12 = vsel %vm908_vm5, %v893_v54, %v2482_v44 }
 0x102   :  { %v2485_v19 = vpop.permute.xlu1 %2484  ;;  %v2490_v20 = vpop.permute.xlu0 %2489 }
 0x103   :  { %v2487_v47 = vunpack.i.h.bf16 %v2485_v19  ;;  %v2486_v48 = vunpack.i.l.bf16 %v2485_v19  ;;  %v2492_v51 = vunpack.i.h.bf16 %v2490_v20  ;;  %v2491_v52 = vunpack.i.l.bf16 %v2490_v20 }
 0x104   :  { %2774 = vrot.lane.b32.xlu1 %v2773_v21, %s3111_s1 }
 0x105   :  { %v911_v2 = vsel %vm908_vm5, %v894_v58, %v2486_v48  ;;  %v912_v4 = vsel %vm908_vm5, %v895_v60, %v2487_v47  ;;  %v926_v5 = vsel %vm925_vm6, %v909_v1, %v2491_v52  ;;  %v927_v6 = vsel %vm925_vm6, %v910_v12, %v2492_v51 }
 0x106   :  { %v3582_v26 = vpop.permute.xlu1 %2494  ;;  %v2500_v29 = vpop.permute.xlu0 %2499 }
 0x107   :  { %v2502_v55 = vunpack.i.h.bf16 %v2500_v29  ;;  %v2501_v57 = vunpack.i.l.bf16 %v2500_v29  ;;  %v2497_v9 = vunpack.i.h.bf16 %v3582_v26  ;;  %v2496_v10 = vunpack.i.l.bf16 %v3582_v26 }
 0x109   :  { %v943_v11 = vsel %vm942_vm7, %v926_v5, %v2501_v57  ;;  %v944_v13 = vsel %vm942_vm7, %v927_v6, %v2502_v55  ;;  %v928_v35 = vsel %vm925_vm6, %v911_v2, %v2496_v10  ;;  %v929_v36 = vsel %vm925_vm6, %v912_v4, %v2497_v9 }
 0x10a   :  { %v2505_v41 = vpop.permute.xlu1 %2504  ;;  %v2510_v42 = vpop.permute.xlu0 %2509 }
 0x10b   :  { %v2512_v62 = vunpack.i.h.bf16 %v2510_v42  ;;  %v2511_v63 = vunpack.i.l.bf16 %v2510_v42  ;;  %v2507_v14 = vunpack.i.h.bf16 %v2505_v41  ;;  %v2506_v15 = vunpack.i.l.bf16 %v2505_v41 }
 0x10d   :  { %v960_v19 = vsel %vm959_vm8, %v943_v11, %v2511_v63  ;;  %v961_v20 = vsel %vm959_vm8, %v944_v13, %v2512_v62  ;;  %v945_v39 = vsel %vm942_vm7, %v928_v35, %v2506_v15  ;;  %v946_v40 = vsel %vm942_vm7, %v929_v36, %v2507_v14 }
 0x10e   :  { %v2515_v0 = vpop.permute.xlu1 %2514  ;;  %v2520_v22 = vpop.permute.xlu0 %2519 }
 0x10f   :  { %v2522_v7 = vunpack.i.h.bf16 %v2520_v22  ;;  %v2521_v8 = vunpack.i.l.bf16 %v2520_v22  ;;  %v2517_v21 = vunpack.i.h.bf16 %v2515_v0  ;;  %v2516_v24 = vunpack.i.l.bf16 %v2515_v0 }
 0x111   :  { %v977_v26 = vsel %vm976_vm9, %v960_v19, %v2521_v8  ;;  %v978_v32 = vsel %vm976_vm9, %v961_v20, %v2522_v7  ;;  %v963_v45 = vsel %vm959_vm8, %v946_v40, %v2517_v21  ;;  %v962_v47 = vsel %vm959_vm8, %v945_v39, %v2516_v24 }
 0x112   :  { %v2525_v16 = vpop.permute.xlu1 %2524  ;;  %v2530_v17 = vpop.permute.xlu0 %2529 }
 0x113   :  { %v2532_v25 = vunpack.i.h.bf16 %v2530_v17  ;;  %v2531_v29 = vunpack.i.l.bf16 %v2530_v17  ;;  %v2527_v30 = vunpack.i.h.bf16 %v2525_v16  ;;  %v2526_v31 = vunpack.i.l.bf16 %v2525_v16 }
 0x115   :  { %v994_v37 = vsel %vm993_vm10, %v977_v26, %v2531_v29  ;;  %v995_v38 = vsel %vm993_vm10, %v978_v32, %v2532_v25  ;;  %v979_v50 = vsel %vm976_vm9, %v962_v47, %v2526_v31  ;;  %v980_v51 = vsel %vm976_vm9, %v963_v45, %v2527_v30 }
 0x116   :  { %v2535_v41 = vpop.permute.xlu1 %2534  ;;  %v2540_v42 = vpop.permute.xlu0 %2539  ;;  %v1010_v44 = vpack.c.bf16 %v995_v38, %v994_v37 }
 0x117   :  { %v2542_v48 = vunpack.i.h.bf16 %v2540_v42  ;;  %v2541_v49 = vunpack.i.l.bf16 %v2540_v42  ;;  %v2537_v0 = vunpack.i.h.bf16 %v2535_v41  ;;  %v2536_v22 = vunpack.i.l.bf16 %v2535_v41 }
 0x118   :  { %2403 = vmatprep.mubr.msk.bf16.mxu0 %vm1045_vm11, %v1010_v44 }
 0x119   :  { %v997_v52 = vsel %vm993_vm10, %v980_v51, %v2542_v48  ;;  %v996_v18 = vsel %vm993_vm10, %v979_v50, %v2541_v49  ;;  %v879_v7 = vsel %vm149_vm0, %v3451_v23, %v2536_v22  ;;  %v880_v8 = vsel %vm149_vm0, %v3483_v46, %v2537_v0 }
 0x11a   :  { %v2545_v54 = vpop.permute.xlu1 %2544  ;;  %v2550_v55 = vpop.permute.xlu0 %2549  ;;  %v1011_v57 = vpack.c.bf16 %v997_v52, %v996_v18 }
 0x11b   :  { %v2547_v2 = vunpack.i.h.bf16 %v2545_v54  ;;  %v2546_v4 = vunpack.i.l.bf16 %v2545_v54  ;;  %v2552_v5 = vunpack.i.h.bf16 %v2550_v55  ;;  %v2551_v6 = vunpack.i.l.bf16 %v2550_v55 }
 0x11c   :  { %2404 = vmatmul.mubr.msk.bf16.vlgmr.msra.gmra.mxu0 %vm1045_vm11, %v1011_v57 }
 0x11d   :  { %v881_v19 = vsel %vm149_vm0, %v3499_v56, %v2546_v4  ;;  %v882_v20 = vsel %vm149_vm0, %v3505_v61, %v2547_v2  ;;  %v897_v23 = vsel %vm891_vm3, %v880_v8, %v2552_v5  ;;  %v896_v46 = vsel %vm891_vm3, %v879_v7, %v2551_v6 }
 0x11e   :  { %v2555_v58 = vpop.permute.xlu1 %2554  ;;  %v2560_v60 = vpop.permute.xlu0 %2559 }
 0x11f   :  { %v2557_v9 = vunpack.i.h.bf16 %v2555_v58  ;;  %v2556_v10 = vunpack.i.l.bf16 %v2555_v58  ;;  %v2562_v14 = vunpack.i.h.bf16 %v2560_v60  ;;  %v2561_v15 = vunpack.i.l.bf16 %v2560_v60 }
 0x121   :  { %v898_v30 = vsel %vm891_vm3, %v881_v19, %v2556_v10  ;;  %v899_v31 = vsel %vm891_vm3, %v882_v20, %v2557_v9  ;;  %v913_v56 = vsel %vm908_vm5, %v896_v46, %v2561_v15  ;;  %v914_v61 = vsel %vm908_vm5, %v897_v23, %v2562_v14 }
 0x122   :  { %v2565_v62 = vpop.permute.xlu1 %2564  ;;  %v2570_v63 = vpop.permute.xlu0 %2569 }
 0x123   :  { %v2567_v16 = vunpack.i.h.bf16 %v2565_v62  ;;  %v2566_v17 = vunpack.i.l.bf16 %v2565_v62  ;;  %v2572_v21 = vunpack.i.h.bf16 %v2570_v63  ;;  %v2571_v24 = vunpack.i.l.bf16 %v2570_v63 }
 0x125   :  { %v915_v37 = vsel %vm908_vm5, %v898_v30, %v2566_v17  ;;  %v916_v38 = vsel %vm908_vm5, %v899_v31, %v2567_v16  ;;  %v930_v39 = vsel %vm925_vm6, %v913_v56, %v2571_v24  ;;  %v931_v40 = vsel %vm925_vm6, %v914_v61, %v2572_v21 }
 0x126   :  { %v2575_v1 = vpop.permute.xlu1 %2574  ;;  %v2580_v12 = vpop.permute.xlu0 %2579 }
 0x127   :  { %v2582_v25 = vunpack.i.h.bf16 %v2580_v12  ;;  %v2581_v29 = vunpack.i.l.bf16 %v2580_v12  ;;  %v2577_v44 = vunpack.i.h.bf16 %v2575_v1  ;;  %v2576_v45 = vunpack.i.l.bf16 %v2575_v1 }
 0x129   :  { %v947_v47 = vsel %vm942_vm7, %v930_v39, %v2581_v29  ;;  %v948_v48 = vsel %vm942_vm7, %v931_v40, %v2582_v25  ;;  %v932_v1 = vsel %vm925_vm6, %v915_v37, %v2576_v45  ;;  %v933_v12 = vsel %vm925_vm6, %v916_v38, %v2577_v44 }
 0x12a   :  { %v2585_v11 = vpop.permute.xlu1 %2584  ;;  %v2590_v13 = vpop.permute.xlu0 %2589 }
 0x12b   :  { %v2592_v26 = vunpack.i.h.bf16 %v2590_v13  ;;  %v2591_v32 = vunpack.i.l.bf16 %v2590_v13  ;;  %v2587_v49 = vunpack.i.h.bf16 %v2585_v11  ;;  %v2586_v50 = vunpack.i.l.bf16 %v2585_v11 }
 0x12d   :  { %v964_v51 = vsel %vm959_vm8, %v947_v47, %v2591_v32  ;;  %v965_v52 = vsel %vm959_vm8, %v948_v48, %v2592_v26  ;;  %v949_v5 = vsel %vm942_vm7, %v932_v1, %v2586_v50  ;;  %v950_v6 = vsel %vm942_vm7, %v933_v12, %v2587_v49 }
 0x12e   :  { %v2595_v35 = vpop.permute.xlu1 %2594  ;;  %v2600_v36 = vpop.permute.xlu0 %2599 }
 0x12f   :  { %v2602_v41 = vunpack.i.h.bf16 %v2600_v36  ;;  %v2601_v42 = vunpack.i.l.bf16 %v2600_v36  ;;  %v2597_v55 = vunpack.i.h.bf16 %v2595_v35  ;;  %v2596_v57 = vunpack.i.l.bf16 %v2595_v35  ;;  %v226_v35 = vld [vmem:[#allocation2 + $0xa0] sm:$0xff] }
 0x131   :  { %v981_v62 = vsel %vm976_vm9, %v964_v51, %v2601_v42  ;;  %v982_v63 = vsel %vm976_vm9, %v965_v52, %v2602_v41  ;;  %v966_v10 = vsel %vm959_vm8, %v949_v5, %v2596_v57  ;;  %v967_v11 = vsel %vm959_vm8, %v950_v6, %v2597_v55 }
 0x132   :  { %v2605_v18 = vpop.permute.xlu1 %2604  ;;  %v2610_v54 = vpop.permute.xlu0 %2609 }
 0x133   :  { %v2612_v58 = vunpack.i.h.bf16 %v2610_v54  ;;  %v2611_v60 = vunpack.i.l.bf16 %v2610_v54  ;;  %v2607_v0 = vunpack.i.h.bf16 %v2605_v18  ;;  %v2606_v22 = vunpack.i.l.bf16 %v2605_v18 }
 0x135   :  { %v998_v2 = vsel %vm993_vm10, %v981_v62, %v2611_v60  ;;  %v999_v4 = vsel %vm993_vm10, %v982_v63, %v2612_v58  ;;  %v983_v15 = vsel %vm976_vm9, %v966_v10, %v2606_v22  ;;  %v984_v16 = vsel %vm976_vm9, %v967_v11, %v2607_v0 }
 0x136   :  { %v2615_v7 = vpop.permute.xlu1 %2614  ;;  %v2620_v8 = vpop.permute.xlu0 %2619  ;;  %v1012_v9 = vpack.c.bf16 %v999_v4, %v998_v2 }
 0x137   :  { %v2622_v13 = vunpack.i.h.bf16 %v2620_v8  ;;  %v2621_v14 = vunpack.i.l.bf16 %v2620_v8  ;;  %v2617_v30 = vunpack.i.h.bf16 %v2615_v7  ;;  %v2616_v31 = vunpack.i.l.bf16 %v2615_v7 }
 0x138   :  { %2407 = vmatprep.mubr.msk.bf16.mxu0 %vm1045_vm11, %v1012_v9 }
 0x139   :  { %v1001_v17 = vsel %vm993_vm10, %v984_v16, %v2622_v13  ;;  %v1000_v19 = vsel %vm993_vm10, %v983_v15, %v2621_v14  ;;  %v883_v38 = vsel %vm149_vm0, %v226_v35, %v2616_v31  ;;  %v884_v39 = vsel %vm149_vm0, %v3524_v27, %v2617_v30 }
 0x13a   :  { %v2625_v20 = vpop.permute.xlu1 %2624  ;;  %v2630_v21 = vpop.permute.xlu0 %2629  ;;  %v1013_v24 = vpack.c.bf16 %v1001_v17, %v1000_v19 }
 0x13b   :  { %v2627_v36 = vunpack.i.h.bf16 %v2625_v20  ;;  %v2626_v56 = vunpack.i.l.bf16 %v2625_v20  ;;  %v2632_v61 = vunpack.i.h.bf16 %v2630_v21  ;;  %v2631_v37 = vunpack.i.l.bf16 %v2630_v21 }
 0x13c   :  { %2408 = vmatmul.mubr.msk.bf16.gmra.mxu0 %vm1045_vm11, %v1013_v24 }
 0x13d   :  { %v885_v50 = vsel %vm149_vm0, %v3526_v28, %v2626_v56  ;;  %v886_v51 = vsel %vm149_vm0, %v3532_v33, %v2627_v36  ;;  %v901_v54 = vsel %vm891_vm3, %v884_v39, %v2632_v61  ;;  %v900_v27 = vsel %vm891_vm3, %v883_v38, %v2631_v37 }
 0x13e   :  { %v2635_v23 = vpop.permute.xlu1 %2634  ;;  %v2640_v46 = vpop.permute.xlu0 %2639 }
 0x13f   :  { %v2637_v40 = vunpack.i.h.bf16 %v2635_v23  ;;  %v2636_v41 = vunpack.i.l.bf16 %v2635_v23  ;;  %v2642_v45 = vunpack.i.h.bf16 %v2640_v46  ;;  %v2641_v47 = vunpack.i.l.bf16 %v2640_v46 }
 0x141   :  { %v902_v58 = vsel %vm891_vm3, %v885_v50, %v2636_v41  ;;  %v903_v60 = vsel %vm891_vm3, %v886_v51, %v2637_v40  ;;  %v917_v28 = vsel %vm908_vm5, %v900_v27, %v2641_v47  ;;  %v918_v33 = vsel %vm908_vm5, %v901_v54, %v2642_v45 }
 0x142   :  { %v2645_v25 = vpop.permute.xlu1 %2644  ;;  %v2650_v29 = vpop.permute.xlu0 %2649 }
 0x143   :  { %v2647_v48 = vunpack.i.h.bf16 %v2645_v25  ;;  %v2646_v49 = vunpack.i.l.bf16 %v2645_v25  ;;  %v2652_v52 = vunpack.i.h.bf16 %v2650_v29  ;;  %v2651_v18 = vunpack.i.l.bf16 %v2650_v29 }
 0x145   :  { %v919_v1 = vsel %vm908_vm5, %v902_v58, %v2646_v49  ;;  %v920_v12 = vsel %vm908_vm5, %v903_v60, %v2647_v48  ;;  %v934_v2 = vsel %vm925_vm6, %v917_v28, %v2651_v18  ;;  %v935_v4 = vsel %vm925_vm6, %v918_v33, %v2652_v52 }
 0x146   :  { %v2655_v26 = vpop.permute.xlu1 %2654  ;;  %v2660_v32 = vpop.permute.xlu0 %2659 }
 0x147   :  { %v2662_v55 = vunpack.i.h.bf16 %v2660_v32  ;;  %v2661_v57 = vunpack.i.l.bf16 %v2660_v32  ;;  %v2657_v7 = vunpack.i.h.bf16 %v2655_v26  ;;  %v2656_v8 = vunpack.i.l.bf16 %v2655_v26 }
 0x149   :  { %v951_v9 = vsel %vm942_vm7, %v934_v2, %v2661_v57  ;;  %v952_v10 = vsel %vm942_vm7, %v935_v4, %v2662_v55  ;;  %v936_v30 = vsel %vm925_vm6, %v919_v1, %v2656_v8  ;;  %v937_v31 = vsel %vm925_vm6, %v920_v12, %v2657_v7 }
 0x14a   :  { %v2665_v42 = vpop.permute.xlu1 %2664  ;;  %v2670_v44 = vpop.permute.xlu0 %2669 }
 0x14b   :  { %v2672_v62 = vunpack.i.h.bf16 %v2670_v44  ;;  %v2671_v63 = vunpack.i.l.bf16 %v2670_v44  ;;  %v2667_v11 = vunpack.i.h.bf16 %v2665_v42  ;;  %v2666_v13 = vunpack.i.l.bf16 %v2665_v42 }
 0x14d   :  { %v968_v14 = vsel %vm959_vm8, %v951_v9, %v2671_v63  ;;  %v969_v15 = vsel %vm959_vm8, %v952_v10, %v2672_v62  ;;  %v953_v35 = vsel %vm942_vm7, %v936_v30, %v2666_v13  ;;  %v954_v36 = vsel %vm942_vm7, %v937_v31, %v2667_v11 }
 0x14e   :  { %v2675_v0 = vpop.permute.xlu1 %2674  ;;  %v2680_v22 = vpop.permute.xlu0 %2679 }
 0x14f   :  { %v2682_v5 = vunpack.i.h.bf16 %v2680_v22  ;;  %v2681_v6 = vunpack.i.l.bf16 %v2680_v22  ;;  %v2677_v19 = vunpack.i.h.bf16 %v2675_v0  ;;  %v2676_v20 = vunpack.i.l.bf16 %v2675_v0 }
 0x151   :  { %v985_v23 = vsel %vm976_vm9, %v968_v14, %v2681_v6  ;;  %v986_v46 = vsel %vm976_vm9, %v969_v15, %v2682_v5  ;;  %v971_v38 = vsel %vm959_vm8, %v954_v36, %v2677_v19  ;;  %v970_v39 = vsel %vm959_vm8, %v953_v35, %v2676_v20 }
 0x152   :  { %v2685_v16 = vpop.permute.xlu1 %2684  ;;  %v2690_v17 = vpop.permute.xlu0 %2689 }
 0x153   :  { %v2692_v21 = vunpack.i.h.bf16 %v2690_v17  ;;  %v2691_v24 = vunpack.i.l.bf16 %v2690_v17  ;;  %v2687_v25 = vunpack.i.h.bf16 %v2685_v16  ;;  %v2686_v29 = vunpack.i.l.bf16 %v2685_v16 }
 0x155   :  { %v1002_v26 = vsel %vm993_vm10, %v985_v23, %v2691_v24  ;;  %v1003_v32 = vsel %vm993_vm10, %v986_v46, %v2692_v21  ;;  %v987_v42 = vsel %vm976_vm9, %v970_v39, %v2686_v29  ;;  %v988_v44 = vsel %vm976_vm9, %v971_v38, %v2687_v25 }
 0x156   :  { %v1014_v56 = vpack.c.bf16 %v1003_v32, %v1002_v26  ;;  %v3690_v61 = vpop.permute.xlu1 %2694  ;;  %v2700_v37 = vpop.permute.xlu0 %2699 }
 0x157   :  { %v2702_v40 = vunpack.i.h.bf16 %v2700_v37  ;;  %v2701_v41 = vunpack.i.l.bf16 %v2700_v37  ;;  %v2697_v27 = vunpack.i.h.bf16 %v3690_v61  ;;  %v2696_v55 = vunpack.i.l.bf16 %v3690_v61 }
 0x158   :  { %2411 = vmatprep.mubr.msk.bf16.mxu0 %vm1045_vm11, %v1014_v56 }
 0x159   :  { %v1005_v45 = vsel %vm993_vm10, %v988_v44, %v2702_v40  ;;  %v1004_v47 = vsel %vm993_vm10, %v987_v42, %v2701_v41  ;;  %v887_v22 = vsel %vm149_vm0, %v3534_v34, %v2696_v55  ;;  %v888_v28 = vsel %vm149_vm0, %v3546_v43, %v2697_v27 }
 0x15a   :  { %v1015_v48 = vpack.c.bf16 %v1005_v45, %v1004_v47  ;;  %v3699_v49 = vpop.permute.xlu1 %2704  ;;  %v3701_v50 = vpop.permute.xlu0 %2709 }
 0x15b   :  { %v2707_v60 = vunpack.i.h.bf16 %v3699_v49  ;;  %v2706_v62 = vunpack.i.l.bf16 %v3699_v49  ;;  %v2712_v63 = vunpack.i.h.bf16 %v3701_v50  ;;  %v2711_v0 = vunpack.i.l.bf16 %v3701_v50 }
 0x15c   :  { %2412 = vmatmul.mubr.msk.bf16.gmra.mxu0 %vm1045_vm11, %v1015_v48 }
 0x15d   :  { %v889_v34 = vsel %vm149_vm0, %v3558_v53, %v2706_v62  ;;  %v890_v43 = vsel %vm149_vm0, %v3564_v59, %v2707_v60  ;;  %v905_v10 = vsel %vm891_vm3, %v888_v28, %v2712_v63  ;;  %v904_v11 = vsel %vm891_vm3, %v887_v22, %v2711_v0 }
 0x15e   :  { %v3704_v51 = vpop.permute.xlu1 %2714  ;;  %v3706_v52 = vpop.permute.xlu0 %2719  ;;  %vm3116_vm0 = vmmov 0  }
 0x15f   :  { %v2717_v33 = vunpack.i.h.bf16 %v3704_v51  ;;  %v2716_v1 = vunpack.i.l.bf16 %v3704_v51  ;;  %v2722_v4 = vunpack.i.h.bf16 %v3706_v52  ;;  %v2721_v5 = vunpack.i.l.bf16 %v3706_v52  ;;  %2435 = vmatprep.mubr.msk.bf16.mxu1 %vm3116_vm0, %v3102_v3 }
 0x161   :  { %v906_v15 = vsel %vm891_vm3, %v889_v34, %v2716_v1  ;;  %v907_v16 = vsel %vm891_vm3, %v890_v43, %v2717_v33  ;;  %v921_v59 = vsel %vm908_vm5, %v904_v11, %v2721_v5  ;;  %v922_v21 = vsel %vm908_vm5, %v905_v10, %v2722_v4 }
 0x162   :  { %v3708_v18 = vpop.permute.xlu1 %2724  ;;  %v3710_v54 = vpop.permute.xlu0 %2729 }
 0x163   :  { %v2727_v6 = vunpack.i.h.bf16 %v3708_v18  ;;  %v2726_v7 = vunpack.i.l.bf16 %v3708_v18  ;;  %v2732_v8 = vunpack.i.h.bf16 %v3710_v54  ;;  %v2731_v9 = vunpack.i.l.bf16 %v3710_v54 }
 0x165   :  { %v923_v24 = vsel %vm908_vm5, %v906_v15, %v2726_v7  ;;  %v924_v23 = vsel %vm908_vm5, %v907_v16, %v2727_v6  ;;  %v938_v46 = vsel %vm925_vm6, %v921_v59, %v2731_v9  ;;  %v939_v25 = vsel %vm925_vm6, %v922_v21, %v2732_v8 }
 0x166   :  { %v2735_v57 = vpop.permute.xlu1 %2734  ;;  %v2740_v58 = vpop.permute.xlu0 %2739 }
 0x167   :  { %v2742_v13 = vunpack.i.h.bf16 %v2740_v58  ;;  %v2741_v14 = vunpack.i.l.bf16 %v2740_v58  ;;  %v2737_v31 = vunpack.i.h.bf16 %v2735_v57  ;;  %v2736_v26 = vunpack.i.l.bf16 %v2735_v57 }
 0x169   :  { %v955_v32 = vsel %vm942_vm7, %v938_v46, %v2741_v14  ;;  %v956_v35 = vsel %vm942_vm7, %v939_v25, %v2742_v13  ;;  %v940_v50 = vsel %vm925_vm6, %v923_v24, %v2736_v26  ;;  %v941_v51 = vsel %vm925_vm6, %v924_v23, %v2737_v31 }
 0x16a   :  { %v2745_v12 = vpop.permute.xlu1 %2744  ;;  %v2750_v2 = vpop.permute.xlu0 %2749 }
 0x16b   :  { %v2752_v17 = vunpack.i.h.bf16 %v2750_v2  ;;  %v2751_v19 = vunpack.i.l.bf16 %v2750_v2  ;;  %v2747_v36 = vunpack.i.h.bf16 %v2745_v12  ;;  %v2746_v56 = vunpack.i.l.bf16 %v2745_v12  ;;  %v3855_v12 = vld [vmem:[%s4290_s3] ss:$0 sm:$0xff]  ;;  %s3112_s3 = smov 48  }
 0x16d   :  { %v972_v61 = vsel %vm959_vm8, %v955_v32, %v2751_v19  ;;  %v973_v37 = vsel %vm959_vm8, %v956_v35, %v2752_v17  ;;  %v957_v54 = vsel %vm942_vm7, %v940_v50, %v2746_v56  ;;  %v958_v27 = vsel %vm942_vm7, %v941_v51, %v2747_v36  ;;  %v1359_v35 = vld [vmem:[#allocation3 + $0x90] sm:$0xff] }
 0x16e   :  { %v2755_v53 = vpop.permute.xlu1 %2754  ;;  %v2760_v20 = vpop.permute.xlu0 %2759 }
 0x16f   :  { %v2762_v29 = vunpack.i.h.bf16 %v2760_v20  ;;  %v2761_v30 = vunpack.i.l.bf16 %v2760_v20  ;;  %v2757_v40 = vunpack.i.h.bf16 %v2755_v53  ;;  %v2756_v41 = vunpack.i.l.bf16 %v2755_v53 }
 0x171   :  { %v989_v45 = vsel %vm976_vm9, %v972_v61, %v2761_v30  ;;  %v990_v47 = vsel %vm976_vm9, %v973_v37, %v2762_v29  ;;  %v974_v58 = vsel %vm959_vm8, %v957_v54, %v2756_v41  ;;  %v975_v60 = vsel %vm959_vm8, %v958_v27, %v2757_v40 }
 0x172   :  { %v2765_v38 = vpop.permute.xlu1 %2764  ;;  %v2770_v39 = vpop.permute.xlu0 %2769 }
 0x173   :  { %v2772_v42 = vunpack.i.h.bf16 %v2770_v39  ;;  %v2771_v44 = vunpack.i.l.bf16 %v2770_v39  ;;  %v2767_v48 = vunpack.i.h.bf16 %v2765_v38  ;;  %v2766_v49 = vunpack.i.l.bf16 %v2765_v38 }
 0x175   :  { %v1006_v52 = vsel %vm993_vm10, %v989_v45, %v2771_v44  ;;  %v1007_v18 = vsel %vm993_vm10, %v990_v47, %v2772_v42  ;;  %v991_v0 = vsel %vm976_vm9, %v974_v58, %v2766_v49  ;;  %v992_v22 = vsel %vm976_vm9, %v975_v60, %v2767_v48 }
 0x176   :  { %v1016_v55 = vpack.c.bf16 %v1007_v18, %v1006_v52  ;;  %v2775_v57 = vpop.permute.xlu1 %2774 }
 0x177   :  { %v2777_v62 = vunpack.i.h.bf16 %v2775_v57  ;;  %v2776_v63 = vunpack.i.l.bf16 %v2775_v57  ;;  %v1279_v57 = vld [vmem:[#allocation3 + $0xa1] sm:$0xff] }
 0x178   :  { %2415 = vmatprep.mubr.msk.bf16.mxu0 %vm1045_vm11, %v1016_v55  ;;  %v1295_v55 = vld [vmem:[#allocation3 + $0xa2] sm:$0xff] }
 0x179   :  { %v1008_v28 = vsel %vm993_vm10, %v991_v0, %v2776_v63  ;;  %v1009_v33 = vsel %vm993_vm10, %v992_v22, %v2777_v62 }
 0x17a   :  { %v1017_v1 = vpack.c.bf16 %v1009_v33, %v1008_v28 }
 0x17c   :  { %2416 = vmatmul.mubr.msk.bf16.gmra.mxu0 %vm1045_vm11, %v1017_v1 }
 0x1dc   :  { %v2405_v2 = vpop.f32.mrf.mxu0 }
 0x1dd   :  { %v1117_v4 = vadd.f32 %v2405_v2, %v3855_v12 }
 0x1de   :  { %v1108_v5 = vpop.f32.mrf.mxu0 }
 0x1df   :  { %v1173_v6 = vmax.f32 %v1117_v4, 0.0  ;;  %v1109_v7 = vadd.f32 %v3855_v12, %v1108_v5 }
 0x1e0   :  { %v2406_v34 = vpop.f32.mrf.mxu0 }
 0x1e1   :  { %1241 = vst.msk [vmem:[#allocation3 + $0x31] sm:$0xff] %vm891_vm3, %v1173_v6  ;;  %v1171_v43 = vmax.f32 %v1109_v7, 0.0  ;;  %v1120_v8 = vadd.f32 %v2406_v34, %v3855_v12 }
 0x1e2   :  { %v1111_v9 = vpop.f32.mrf.mxu0 }
 0x1e3   :  { %1239 = vst.msk [vmem:[#allocation3 + $0x11] sm:$0xff] %vm891_vm3, %v1171_v43  ;;  %v1174_v10 = vmax.f32 %v1120_v8, 0.0  ;;  %v1112_v11 = vadd.f32 %v3855_v12, %v1111_v9 }
 0x1e5   :  { %1242 = vst.msk [vmem:[#allocation3 + $0x41] sm:$0xff] %vm891_vm3, %v1174_v10  ;;  %v1172_v13 = vmax.f32 %v1112_v11, 0.0 }
 0x1e7   :  { %1240 = vst.msk [vmem:[#allocation3 + $0x21] sm:$0xff] %vm891_vm3, %v1172_v13 }
 0x1fc   :  { %v2409_v14 = vpop.f32.mrf.mxu0 }
 0x1fd   :  { %v1133_v15 = vadd.f32 %v2409_v14, %v3855_v12 }
 0x1fe   :  { %v1124_v16 = vpop.f32.mrf.mxu0 }
 0x1ff   :  { %v1177_v17 = vmax.f32 %v1133_v15, 0.0  ;;  %v1125_v19 = vadd.f32 %v3855_v12, %v1124_v16 }
 0x200   :  { %v2410_v53 = vpop.f32.mrf.mxu0 }
 0x201   :  { %1245 = vst.msk [vmem:[#allocation3 + $0x71] sm:$0xff] %vm891_vm3, %v1177_v17  ;;  %v1175_v20 = vmax.f32 %v1125_v19, 0.0  ;;  %v1136_v59 = vadd.f32 %v2410_v53, %v3855_v12 }
 0x202   :  { %v1127_v21 = vpop.f32.mrf.mxu0 }
 0x203   :  { %1243 = vst.msk [vmem:[#allocation3 + $0x51] sm:$0xff] %vm891_vm3, %v1175_v20  ;;  %v1178_v24 = vmax.f32 %v1136_v59, 0.0  ;;  %v1128_v23 = vadd.f32 %v3855_v12, %v1127_v21 }
 0x205   :  { %1246 = vst.msk [vmem:[#allocation3 + $0x81] sm:$0xff] %vm891_vm3, %v1178_v24  ;;  %v1176_v46 = vmax.f32 %v1128_v23, 0.0 }
 0x207   :  { %1244 = vst.msk [vmem:[#allocation3 + $0x61] sm:$0xff] %vm891_vm3, %v1176_v46 }
 0x208   :  { %v1325_v25 = vld [vmem:[#allocation3 + $0x71] sm:$0xff] }
 0x209   :  { %v3875_v30 = vld [vmem:[#allocation3 + $0x70] sm:$0xff] }
 0x20a   :  { %v1341_v56 = vld [vmem:[#allocation3 + $0x72] sm:$0xff] }
 0x20c   :  { %v3873_v29 = vld [vmem:[#allocation3 + $0x81] sm:$0xff] }
 0x20d   :  { %v1310_v31 = vld [vmem:[#allocation3 + $0x80] sm:$0xff]  ;;  %v2783_v26 = vpack.i.bf16 %v3873_v29, %v1325_v25 }
 0x20e   :  { %v2778_v32 = vpack.i.bf16 %v1310_v31, %v3875_v30  ;;  %v3879_v36 = vld [vmem:[#allocation3 + $0x82] sm:$0xff]  ;;  %v2793_v61 = vpack.i.bf16 %v1359_v35, %v1310_v31 }
 0x20f   :  { %2784 = vrot.lane.b32.xlu1 %v2783_v26, %s3111_s1  ;;  %v2788_v37 = vpack.i.bf16 %v3879_v36, %v1341_v56  ;;  %v3884_v38 = vld [vmem:[#allocation3 + $0x62] sm:$0xff] }
 0x210   :  { %2779 = vrot.lane.b32.xlu0 %v2778_v32, %s3109_s19  ;;  %v3886_v39 = vld [vmem:[#allocation3 + $0x61] sm:$0xff]  ;;  %v3891_v40 = vpack.i.bf16 %v1341_v56, %v3884_v38 }
 0x211   :  { %v3894_v41 = vpack.i.bf16 %v1325_v25, %v3886_v39 }
 0x213   :  { %2794 = vrot.lane.b32.xlu1 %v2793_v61, %s3112_s3 }
 0x214   :  { %2789 = vrot.lane.b32.xlu0 %v2788_v37, %s3113_s23 }
 0x217   :  { %2804 = vrot.lane.b32.xlu1 %v3891_v40, %s3107_s13 }
 0x218   :  { %2799 = vrot.lane.b32.xlu0 %v3894_v41, %s3105_s9 }
 0x21c   :  { %v2413_v42 = vpop.f32.mrf.mxu0 }
 0x21d   :  { %v1149_v44 = vadd.f32 %v2413_v42, %v3855_v12 }
 0x21e   :  { %v1140_v45 = vpop.f32.mrf.mxu0 }
 0x21f   :  { %v1181_v47 = vmax.f32 %v1149_v44, 0.0  ;;  %v1141_v48 = vadd.f32 %v3855_v12, %v1140_v45 }
 0x220   :  { %v2414_v49 = vpop.f32.mrf.mxu0 }
 0x221   :  { %1249 = vst.msk [vmem:[#allocation3 + $0xd1] sm:$0xff] %vm891_vm3, %v1181_v47  ;;  %v1179_v50 = vmax.f32 %v1141_v48, 0.0  ;;  %v1152_v51 = vadd.f32 %v2414_v49, %v3855_v12 }
 0x222   :  { %v1143_v52 = vpop.f32.mrf.mxu0 }
 0x223   :  { %1247 = vst.msk [vmem:[#allocation3 + $0xb1] sm:$0xff] %vm891_vm3, %v1179_v50  ;;  %v1182_v18 = vmax.f32 %v1152_v51, 0.0  ;;  %v1144_v54 = vadd.f32 %v3855_v12, %v1143_v52  ;;  %v1367_v52 = vld [vmem:[#allocation3 + $0x130] sm:$0xff] }
 0x225   :  { %1250 = vst.msk [vmem:[#allocation3 + $0xe1] sm:$0xff] %vm891_vm3, %v1182_v18  ;;  %v1180_v27 = vmax.f32 %v1144_v54, 0.0  ;;  %v1383_v18 = vld [vmem:[#allocation3 + $0x131] sm:$0xff] }
 0x227   :  { %1248 = vst.msk [vmem:[#allocation3 + $0xc1] sm:$0xff] %vm891_vm3, %v1180_v27 }
 0x228   :  { %v1329_v28 = vld [vmem:[#allocation3 + $0xd1] sm:$0xff] }
 0x229   :  { %v3912_v33 = vld [vmem:[#allocation3 + $0xd0] sm:$0xff] }
 0x22a   :  { %v1296_v58 = vld [vmem:[#allocation3 + $0xb2] sm:$0xff] }
 0x22b   :  { %v1280_v60 = vld [vmem:[#allocation3 + $0xb1] sm:$0xff]  ;;  %v2813_v62 = vpack.i.bf16 %v1296_v58, %v1295_v55 }
 0x22c   :  { %v2808_v63 = vpack.i.bf16 %v1280_v60, %v1279_v57  ;;  %v1330_v0 = vld [vmem:[#allocation3 + $0xe1] sm:$0xff]  ;;  %v1298_v6 = vld [vmem:[#allocation3 + $0xd2] sm:$0xff] }
 0x22d   :  { %v3908_v22 = vld [vmem:[#allocation3 + $0xe0] sm:$0xff]  ;;  %2814 = vrot.lane.b32.xlu1 %v2813_v62, %s3107_s13  ;;  %v2823_v1 = vpack.i.bf16 %v1330_v0, %v1329_v28  ;;  %v3924_v11 = vld [vmem:[#allocation3 + $0xb0] sm:$0xff] }
 0x22e   :  { %2809 = vrot.lane.b32.xlu0 %v2808_v63, %s3105_s9  ;;  %v2818_v2 = vpack.i.bf16 %v3908_v22, %v3912_v33  ;;  %v1297_v4 = vld [vmem:[#allocation3 + $0xc2] sm:$0xff]  ;;  %v1399_v55 = vld [vmem:[#allocation3 + $0x132] sm:$0xff] }
 0x22f   :  { %v1346_v5 = vld [vmem:[#allocation3 + $0xe2] sm:$0xff]  ;;  %v2838_v7 = vpack.i.bf16 %v1298_v6, %v1297_v4  ;;  %v2853_v20 = vpack.i.bf16 %v1297_v4, %v1296_v58  ;;  %v1375_v63 = vld [vmem:[#allocation3 + $0x91] sm:$0xff] }
 0x230   :  { %v2828_v34 = vpack.i.bf16 %v1346_v5, %v1298_v6  ;;  %v1328_v43 = vld [vmem:[#allocation3 + $0xc1] sm:$0xff] }
 0x231   :  { %2824 = vrot.lane.b32.xlu1 %v2823_v1, %s3111_s1  ;;  %v2848_v8 = vpack.i.bf16 %v1328_v43, %v1280_v60  ;;  %v2833_v9 = vpack.i.bf16 %v1329_v28, %v1328_v43  ;;  %v3920_v10 = vld [vmem:[#allocation3 + $0xc0] sm:$0xff]  ;;  %v2933_v28 = vpack.i.bf16 %v1375_v63, %v3873_v29  ;;  %v1391_v1 = vld [vmem:[#allocation3 + $0x92] sm:$0xff] }
 0x232   :  { %2819 = vrot.lane.b32.xlu0 %v2818_v2, %s3109_s19  ;;  %v2858_v13 = vpack.i.bf16 %v3912_v33, %v3920_v10  ;;  %v2843_v14 = vpack.i.bf16 %v3920_v10, %v3924_v11  ;;  %v2943_v4 = vpack.i.bf16 %v1391_v1, %v3879_v36  ;;  %v1275_v36 = vld [vmem:[#allocation3 + $0x41] sm:$0xff] }
 0x233   :  { %v1271_v1 = vld [vmem:[#allocation3 + $0x1] sm:$0xff] }
 0x235   :  { %2839 = vrot.lane.b32.xlu1 %v2838_v7, %s3107_s13 }
 0x236   :  { %2829 = vrot.lane.b32.xlu0 %v2828_v34, %s3113_s23  ;;  %v1276_v34 = vld [vmem:[#allocation3 + $0x51] sm:$0xff] }
 0x237   :  { %v3978_v43 = vpack.i.bf16 %v1276_v34, %v1275_v36 }
 0x239   :  { %2849 = vrot.lane.b32.xlu1 %v2848_v8, %s3111_s1  ;;  %v1292_v8 = vld [vmem:[#allocation3 + $0x52] sm:$0xff] }
 0x23a   :  { %2834 = vrot.lane.b32.xlu0 %v2833_v9, %s3105_s9 }
 0x23c   :  { %v2417_v15 = vpop.f32.mrf.mxu0 }
 0x23d   :  { %v1165_v16 = vadd.f32 %v2417_v15, %v3855_v12  ;;  %2859 = vrot.lane.b32.xlu1 %v2858_v13, %s3112_s3  ;;  %v1291_v13 = vld [vmem:[#allocation3 + $0x42] sm:$0xff] }
 0x23e   :  { %2844 = vrot.lane.b32.xlu0 %v2843_v14, %s3109_s19  ;;  %v1156_v17 = vpop.f32.mrf.mxu0  ;;  %v3983_v14 = vld [vmem:[#allocation3 + $0x50] sm:$0xff]  ;;  %v3985_v15 = vpack.i.bf16 %v1292_v8, %v1291_v13 }
 0x23f   :  { %v1185_v19 = vmax.f32 %v1165_v16, 0.0  ;;  %v1157_v53 = vadd.f32 %v3855_v12, %v1156_v17  ;;  %v2993_v17 = vpack.i.bf16 %v3886_v39, %v1276_v34 }
 0x240   :  { %v2418_v59 = vpop.f32.mrf.mxu0 }
 0x241   :  { %1253 = vst.msk [vmem:[#allocation3 + $0x111] sm:$0xff] %vm891_vm3, %v1185_v19  ;;  %v1183_v21 = vmax.f32 %v1157_v53, 0.0  ;;  %v1168_v24 = vadd.f32 %v2418_v59, %v3855_v12  ;;  %2869 = vrot.lane.b32.xlu1 %v2838_v7, %s3114_s24  ;;  %v2998_v19 = vpack.i.bf16 %v3884_v38, %v1292_v8  ;;  %v4004_v38 = vld [vmem:[#allocation3 + $0x22] sm:$0xff]  ;;  %v1288_v8 = vld [vmem:[#allocation3 + $0x12] sm:$0xff] }
 0x242   :  { %2854 = vrot.lane.b32.xlu0 %v2853_v20, %s3113_s23  ;;  %v1159_v23 = vpop.f32.mrf.mxu0  ;;  %v3996_v20 = vld [vmem:[#allocation3 + $0x21] sm:$0xff] }
 0x243   :  { %1251 = vst.msk [vmem:[#allocation3 + $0xf1] sm:$0xff] %vm891_vm3, %v1183_v21  ;;  %v1186_v46 = vmax.f32 %v1168_v24, 0.0  ;;  %v1160_v25 = vadd.f32 %v3855_v12, %v1159_v23  ;;  %v1274_v24 = vld [vmem:[#allocation3 + $0x31] sm:$0xff]  ;;  %v4006_v23 = vld [vmem:[#allocation3 + $0x40] sm:$0xff] }
 0x244   :  { %v4002_v39 = vpack.i.bf16 %v1274_v24, %v3996_v20 }
 0x245   :  { %1254 = vst.msk [vmem:[#allocation3 + $0x121] sm:$0xff] %vm891_vm3, %v1186_v46  ;;  %v1184_v31 = vmax.f32 %v1160_v25, 0.0 }
 0x246   :  { %2864 = vrot.lane.b32.xlu0 %v2833_v9, %s3115_s25  ;;  %v1308_v9 = vld [vmem:[#allocation3 + $0x60] sm:$0xff] }
 0x247   :  { %1252 = vst.msk [vmem:[#allocation3 + $0x101] sm:$0xff] %vm891_vm3, %v1184_v31  ;;  %v2988_v16 = vpack.i.bf16 %v1308_v9, %v3983_v14  ;;  %v3003_v53 = vpack.i.bf16 %v3875_v30, %v1308_v9  ;;  %v1290_v31 = vld [vmem:[#allocation3 + $0x32] sm:$0xff] }
 0x248   :  { %v3951_v42 = vld [vmem:[#allocation3 + $0x110] sm:$0xff] }
 0x249   :  { %v1333_v48 = vld [vmem:[#allocation3 + $0x111] sm:$0xff] }
 0x24a   :  { %v1300_v26 = vld [vmem:[#allocation3 + $0xf2] sm:$0xff] }
 0x24b   :  { %v1284_v32 = vld [vmem:[#allocation3 + $0xf1] sm:$0xff]  ;;  %v2878_v35 = vpack.i.bf16 %v1300_v26, %v1346_v5 }
 0x24c   :  { %v2873_v56 = vpack.i.bf16 %v1284_v32, %v1330_v0  ;;  %v3943_v61 = vld [vmem:[#allocation3 + $0xf0] sm:$0xff]  ;;  %v1318_v37 = vld [vmem:[#allocation3 + $0x120] sm:$0xff] }
 0x24d   :  { %2879 = vrot.lane.b32.xlu1 %v2878_v35, %s3107_s13  ;;  %v2883_v12 = vpack.i.bf16 %v3943_v61, %v3908_v22  ;;  %v2898_v44 = vpack.i.bf16 %v1318_v37, %v3951_v42  ;;  %v1334_v45 = vld [vmem:[#allocation3 + $0x121] sm:$0xff]  ;;  %v1349_v49 = vld [vmem:[#allocation3 + $0x112] sm:$0xff]  ;;  %v2913_v54 = vpack.i.bf16 %v1367_v52, %v1318_v37 }
 0x24e   :  { %2874 = vrot.lane.b32.xlu0 %v2873_v56, %s3105_s9  ;;  %v1350_v47 = vld [vmem:[#allocation3 + $0x122] sm:$0xff]  ;;  %v2903_v50 = vpack.i.bf16 %v1334_v45, %v1333_v48  ;;  %v2918_v27 = vpack.i.bf16 %v1383_v18, %v1334_v45 }
 0x24f   :  { %v2908_v51 = vpack.i.bf16 %v1350_v47, %v1349_v49  ;;  %v1285_v57 = vld [vmem:[#allocation3 + $0x101] sm:$0xff]  ;;  %v2923_v58 = vpack.i.bf16 %v1399_v55, %v1350_v47  ;;  %v3038_v47 = vpack.i.bf16 %v1291_v13, %v1290_v31  ;;  %v4051_v13 = vld [vmem:[#allocation3 + $0x10] sm:$0xff] }
 0x250   :  { %v2928_v60 = vpack.i.bf16 %v1333_v48, %v1285_v57  ;;  %v1301_v62 = vld [vmem:[#allocation3 + $0x102] sm:$0xff]  ;;  %v2953_v6 = vpack.i.bf16 %v1285_v57, %v1284_v32  ;;  %v3043_v48 = vpack.i.bf16 %v3983_v14, %v4006_v23 }
 0x251   :  { %2884 = vrot.lane.b32.xlu1 %v2883_v12, %s3112_s3  ;;  %v2938_v0 = vpack.i.bf16 %v1349_v49, %v1301_v62  ;;  %v3963_v2 = vld [vmem:[#allocation3 + $0x100] sm:$0xff]  ;;  %v2958_v7 = vpack.i.bf16 %v1301_v62, %v1300_v26  ;;  %v4012_v26 = vld [vmem:[#allocation3 + $0x30] sm:$0xff] }
 0x252   :  { %2889 = vrot.lane.b32.xlu0 %v2873_v56, %s3115_s25  ;;  %v2948_v5 = vpack.i.bf16 %v3963_v2, %v3943_v61  ;;  %v2963_v29 = vpack.i.bf16 %v3951_v42, %v3963_v2  ;;  %v3028_v32 = vpack.i.bf16 %v4006_v23, %v4012_v26 }
 0x255   :  { %2894 = vrot.lane.b32.xlu1 %v2878_v35, %s3114_s24 }
 0x256   :  { %2899 = vrot.lane.b32.xlu0 %v2898_v44, %s3109_s19 }
 0x259   :  { %2904 = vrot.lane.b32.xlu1 %v2903_v50, %s3111_s1 }
 0x25a   :  { %2909 = vrot.lane.b32.xlu0 %v2908_v51, %s3113_s23 }
 0x25d   :  { %2914 = vrot.lane.b32.xlu1 %v2913_v54, %s3112_s3 }
 0x25e   :  { %2919 = vrot.lane.b32.xlu0 %v2918_v27, %s3115_s25 }
 0x261   :  { %2924 = vrot.lane.b32.xlu1 %v2923_v58, %s3114_s24 }
 0x262   :  { %2929 = vrot.lane.b32.xlu0 %v2928_v60, %s3105_s9 }
 0x265   :  { %2939 = vrot.lane.b32.xlu1 %v2938_v0, %s3107_s13 }
 0x266   :  { %2934 = vrot.lane.b32.xlu0 %v2933_v28, %s3115_s25 }
 0x269   :  { %2944 = vrot.lane.b32.xlu1 %v2943_v4, %s3114_s24  ;;  %v1272_v4 = vld [vmem:[#allocation3 + $0x11] sm:$0xff] }
 0x26a   :  { %2949 = vrot.lane.b32.xlu0 %v2948_v5, %s3109_s19  ;;  %v3058_v34 = vpack.i.bf16 %v1272_v4, %v1271_v1 }
 0x26d   :  { %2954 = vrot.lane.b32.xlu1 %v2953_v6, %s3111_s1 }
 0x26e   :  { %2959 = vrot.lane.b32.xlu0 %v2958_v7, %s3113_s23 }
 0x271   :  { %2964 = vrot.lane.b32.xlu1 %v2963_v29, %s3112_s3 }
 0x272   :  { %2969 = vrot.lane.b32.xlu0 %v2928_v60, %s3115_s25 }
 0x275   :  { %2979 = vrot.lane.b32.xlu1 %v2938_v0, %s3114_s24 }
 0x276   :  { %2974 = vrot.lane.b32.xlu0 %v3978_v43, %s3105_s9 }
 0x279   :  { %2984 = vrot.lane.b32.xlu1 %v3985_v15, %s3107_s13 }
 0x27a   :  { %2989 = vrot.lane.b32.xlu0 %v2988_v16, %s3109_s19 }
 0x27d   :  { %2994 = vrot.lane.b32.xlu1 %v2993_v17, %s3111_s1  ;;  %v3073_v17 = vpack.i.bf16 %v3996_v20, %v1272_v4 }
 0x27e   :  { %2999 = vrot.lane.b32.xlu0 %v2998_v19, %s3113_s23  ;;  %v3078_v19 = vpack.i.bf16 %v4004_v38, %v1288_v8 }
 0x281   :  { %v2785_v59 = vpop.permute.xlu1 %2784  ;;  %3004 = vrot.lane.b32.xlu1 %v3003_v53, %s3112_s3  ;;  %v1263_v53 = vld [vmem:[#allocation3 + $0xa0] sm:$0xff] }
 0x282   :  { %v2780_v21 = vpop.permute.xlu0 %2779  ;;  %3009 = vrot.lane.b32.xlu0 %v3894_v41, %s3115_s25  ;;  %v4015_v41 = vpack.i.bf16 %v1290_v31, %v4004_v38  ;;  %v2787_v18 = vunpack.i.h.bf16 %v2785_v59  ;;  %v2786_v54 = vunpack.i.l.bf16 %v2785_v59 }
 0x283   :  { %v2782_v49 = vunpack.i.h.bf16 %v2780_v21  ;;  %v2781_v50 = vunpack.i.l.bf16 %v2780_v21 }
 0x285   :  { %v2795_v46 = vpop.permute.xlu1 %2794  ;;  %3014 = vrot.lane.b32.xlu1 %v3891_v40, %s3114_s24  ;;  %v3033_v40 = vpack.i.bf16 %v1275_v36, %v1274_v24  ;;  %v1287_v36 = vld [vmem:[#allocation3 + $0x2] sm:$0xff] }
 0x286   :  { %v2790_v25 = vpop.permute.xlu0 %2789  ;;  %3019 = vrot.lane.b32.xlu0 %v4002_v39, %s3105_s9  ;;  %v2797_v63 = vunpack.i.h.bf16 %v2795_v46  ;;  %v3063_v16 = vpack.i.bf16 %v1288_v8, %v1287_v36 }
 0x287   :  { %v2792_v57 = vunpack.i.h.bf16 %v2790_v25  ;;  %v2791_v58 = vunpack.i.l.bf16 %v2790_v25 }
 0x289   :  { %v2805_v35 = vpop.permute.xlu1 %2804  ;;  %3024 = vrot.lane.b32.xlu1 %v4015_v41, %s3107_s13 }
 0x28a   :  { %v2800_v56 = vpop.permute.xlu0 %2799  ;;  %3029 = vrot.lane.b32.xlu0 %v3028_v32, %s3109_s19  ;;  %v2807_v12 = vunpack.i.h.bf16 %v2805_v35  ;;  %v2806_v37 = vunpack.i.l.bf16 %v2805_v35 }
 0x28b   :  { %v2802_v44 = vunpack.i.h.bf16 %v2800_v56  ;;  %v2801_v45 = vunpack.i.l.bf16 %v2800_v56 }
 0x28d   :  { %v1919_v51 = vsel %vm891_vm3, %v3875_v30, %v2802_v44  ;;  %v1918_v52 = vsel %vm891_vm3, %v1308_v9, %v2801_v45  ;;  %3034 = vrot.lane.b32.xlu1 %v3033_v40, %s3111_s1  ;;  %v2796_v30 = vunpack.i.l.bf16 %v2795_v46  ;;  %v4046_v9 = vld [vmem:[#allocation3 + $0x20] sm:$0xff] }
 0x28e   :  { %v1935_v27 = vsel %vm925_vm6, %v1919_v51, %v2807_v12  ;;  %v1934_v55 = vsel %vm925_vm6, %v1918_v52, %v2806_v37  ;;  %3039 = vrot.lane.b32.xlu0 %v3038_v47, %s3113_s23  ;;  %v3083_v21 = vpack.i.bf16 %v4012_v26, %v4046_v9  ;;  %v3117_v12 = vmov 0  }
 0x28f   :  { %v1951_v60 = vsel %vm959_vm8, %v1935_v27, %v2782_v49  ;;  %v1950_v62 = vsel %vm959_vm8, %v1934_v55, %v2781_v50  ;;  %3098 = vset.pattern.permute.xlu0 %v3117_v12 }
 0x290   :  { %v1966_v0 = vsel %vm993_vm10, %v1950_v62, %v2786_v54  ;;  %v1967_v28 = vsel %vm993_vm10, %v1951_v60, %v2787_v18 }
 0x291   :  { %v1983_v5 = vsel %vm1976_vm14, %v1966_v0, %v2791_v58  ;;  %v1984_v6 = vsel %vm1976_vm14, %v1967_v28, %v2792_v57  ;;  %3044 = vrot.lane.b32.xlu1 %v3043_v48, %s3112_s3 }
 0x292   :  { %3049 = vrot.lane.b32.xlu0 %v3978_v43, %s3115_s25  ;;  %v4041_v7 = vsel %vm1993_vm15, %v1983_v5, %v2796_v30  ;;  %v4044_v29 = vsel %vm1993_vm15, %v1984_v6, %v2797_v63  ;;  %v3068_v43 = vpack.i.bf16 %v4046_v9, %v4051_v13 }
 0x295   :  { %3054 = vrot.lane.b32.xlu1 %v3985_v15, %s3114_s24 }
 0x296   :  { %3059 = vrot.lane.b32.xlu0 %v3058_v34, %s3105_s9 }
 0x299   :  { %3064 = vrot.lane.b32.xlu1 %v3063_v16, %s3107_s13 }
 0x29a   :  { %3069 = vrot.lane.b32.xlu0 %v3068_v43, %s3109_s19 }
 0x29d   :  { %3074 = vrot.lane.b32.xlu1 %v3073_v17, %s3111_s1 }
 0x29e   :  { %3079 = vrot.lane.b32.xlu0 %v3078_v19, %s3113_s23 }
 0x29f   :  { %v2815_v15 = vpop.permute.xlu1 %2814 }
 0x2a0   :  { %v2810_v59 = vpop.permute.xlu0 %2809  ;;  %v2817_v24 = vunpack.i.h.bf16 %v2815_v15  ;;  %v2816_v46 = vunpack.i.l.bf16 %v2815_v15 }
 0x2a1   :  { %v2812_v25 = vunpack.i.h.bf16 %v2810_v59  ;;  %v2811_v31 = vunpack.i.l.bf16 %v2810_v59  ;;  %3084 = vrot.lane.b32.xlu1 %v3083_v21, %s3112_s3 }
 0x2a2   :  { %3089 = vrot.lane.b32.xlu0 %v4002_v39, %s3115_s25  ;;  %v2053_v39 = vld [vmem:[%s4291_s4] sm:$0xff] }
 0x2a3   :  { %v1921_v20 = vsel %vm891_vm3, %v3924_v11, %v2812_v25  ;;  %v1920_v38 = vsel %vm891_vm3, %v1263_v53, %v2811_v31  ;;  %v2825_v32 = vpop.permute.xlu1 %2824 }
 0x2a4   :  { %v2820_v35 = vpop.permute.xlu0 %2819  ;;  %v1936_v56 = vsel %vm925_vm6, %v1920_v38, %v2816_v46  ;;  %v1937_v40 = vsel %vm925_vm6, %v1921_v20, %v2817_v24  ;;  %v2827_v54 = vunpack.i.h.bf16 %v2825_v32  ;;  %v2826_v27 = vunpack.i.l.bf16 %v2825_v32 }
 0x2a5   :  { %3094 = vrot.lane.b32.xlu1 %v4015_v41, %s3114_s24  ;;  %v2822_v51 = vunpack.i.h.bf16 %v2820_v35  ;;  %v2821_v52 = vunpack.i.l.bf16 %v2820_v35 }
 0x2a6   :  { %2056 = vperm.xlu0 %3098, %v2053_v39  }
 0x2a7   :  { %v2840_v37 = vpop.permute.xlu1 %2839 }
 0x2a8   :  { %v4077_v44 = vpop.permute.xlu0 %2829  ;;  %v2842_v49 = vunpack.i.h.bf16 %v2840_v37  ;;  %v2841_v50 = vunpack.i.l.bf16 %v2840_v37 }
 0x2a9   :  { %v2832_v37 = vunpack.i.h.bf16 %v4077_v44 }
 0x2ab   :  { %v2850_v11 = vpop.permute.xlu1 %2849 }
 0x2ac   :  { %v2835_v45 = vpop.permute.xlu0 %2834  ;;  %v2852_v1 = vunpack.i.h.bf16 %v2850_v11 }
 0x2ad   :  { %v2837_v47 = vunpack.i.h.bf16 %v2835_v45  ;;  %v2836_v48 = vunpack.i.l.bf16 %v2835_v45 }
 0x2af   :  { %v1923_v41 = vsel %vm891_vm3, %v3912_v33, %v2837_v47  ;;  %v1922_v18 = vsel %vm891_vm3, %v3920_v10, %v2836_v48  ;;  %v2860_v63 = vpop.permute.xlu1 %2859  ;;  %v2851_v10 = vunpack.i.l.bf16 %v2850_v11  ;;  %v2831_v11 = vunpack.i.l.bf16 %v4077_v44 }
 0x2b0   :  { %v1939_v55 = vsel %vm925_vm6, %v1923_v41, %v2842_v49  ;;  %v1938_v57 = vsel %vm925_vm6, %v1922_v18, %v2841_v50  ;;  %v2845_v58 = vpop.permute.xlu0 %2844  ;;  %v2862_v15 = vunpack.i.h.bf16 %v2860_v63  ;;  %v2861_v53 = vunpack.i.l.bf16 %v2860_v63 }
 0x2b1   :  { %v1954_v60 = vsel %vm959_vm8, %v1938_v57, %v2821_v52  ;;  %v1955_v62 = vsel %vm959_vm8, %v1939_v55, %v2822_v51  ;;  %v2847_v30 = vunpack.i.h.bf16 %v2845_v58  ;;  %v2846_v0 = vunpack.i.l.bf16 %v2845_v58 }
 0x2b2   :  { %v1970_v28 = vsel %vm993_vm10, %v1954_v60, %v2826_v27  ;;  %v1971_v33 = vsel %vm993_vm10, %v1955_v62, %v2827_v54 }
 0x2b3   :  { %v1952_v4 = vsel %vm959_vm8, %v1936_v56, %v2846_v0  ;;  %v1953_v5 = vsel %vm959_vm8, %v1937_v40, %v2847_v30  ;;  %v2870_v43 = vpop.permute.xlu1 %2869  ;;  %v1987_v50 = vsel %vm1976_vm14, %v1970_v28, %v2831_v11  ;;  %v1988_v51 = vsel %vm1976_vm14, %v1971_v33, %v2832_v37 }
 0x2b4   :  { %v2855_v6 = vpop.permute.xlu0 %2854  ;;  %v1968_v8 = vsel %vm993_vm10, %v1952_v4, %v2851_v10  ;;  %v1969_v16 = vsel %vm993_vm10, %v1953_v5, %v2852_v1  ;;  %v2872_v46 = vunpack.i.h.bf16 %v2870_v43  ;;  %v2871_v25 = vunpack.i.l.bf16 %v2870_v43 }
 0x2b5   :  { %v2857_v34 = vunpack.i.h.bf16 %v2855_v6  ;;  %v2856_v36 = vunpack.i.l.bf16 %v2855_v6 }
 0x2b7   :  { %v1985_v17 = vsel %vm1976_vm14, %v1968_v8, %v2856_v36  ;;  %v1986_v19 = vsel %vm1976_vm14, %v1969_v16, %v2857_v34 }
 0x2b8   :  { %v2865_v59 = vpop.permute.xlu0 %2864  ;;  %v2002_v31 = vsel %vm1993_vm15, %v1985_v17, %v2861_v53  ;;  %v2003_v20 = vsel %vm1993_vm15, %v1986_v19, %v2862_v15 }
 0x2b9   :  { %v2867_v21 = vunpack.i.h.bf16 %v2865_v59  ;;  %v2866_v24 = vunpack.i.l.bf16 %v2865_v59 }
 0x2bb   :  { %v2019_v38 = vsel %vm2010_vm1, %v2002_v31, %v2866_v24  ;;  %v2020_v32 = vsel %vm2010_vm1, %v2003_v20, %v2867_v21 }
 0x2bc   :  { %v4100_v35 = vsel %vm2027_vm2, %v2019_v38, %v2871_v25  ;;  %v4103_v56 = vsel %vm2027_vm2, %v2020_v32, %v2872_v46 }
 0x2bd   :  { %v2048_v40 = vpack.c.bf16 %v4103_v56, %v4100_v35 }
 0x2bf   :  { %v2880_v12 = vpop.permute.xlu1 %2879 }
 0x2c0   :  { %v2875_v39 = vpop.permute.xlu0 %2874  ;;  %v2881_v5 = vunpack.i.l.bf16 %v2880_v12  ;;  %v2882_v6 = vunpack.i.h.bf16 %v2880_v12 }
 0x2c1   :  { %v2876_v33 = vunpack.i.l.bf16 %v2875_v39  ;;  %v2877_v1 = vunpack.i.h.bf16 %v2875_v39 }
 0x2c3   :  { %v2885_v45 = vpop.permute.xlu1 %2884  ;;  %v1924_v34 = vsel %vm891_vm3, %v3908_v22, %v2876_v33  ;;  %v1925_v36 = vsel %vm891_vm3, %v3943_v61, %v2877_v1 }
 0x2c4   :  { %v2890_v47 = vpop.permute.xlu0 %2889  ;;  %v2887_v48 = vunpack.i.h.bf16 %v2885_v45  ;;  %v2886_v49 = vunpack.i.l.bf16 %v2885_v45  ;;  %v1940_v19 = vsel %vm925_vm6, %v1924_v34, %v2881_v5  ;;  %v1941_v21 = vsel %vm925_vm6, %v1925_v36, %v2882_v6 }
 0x2c5   :  { %v2892_v52 = vunpack.i.h.bf16 %v2890_v47  ;;  %v2891_v41 = vunpack.i.l.bf16 %v2890_v47 }
 0x2c6   :  { %v2004_v18 = vsel %vm1993_vm15, %v1987_v50, %v2886_v49  ;;  %v2005_v54 = vsel %vm1993_vm15, %v1988_v51, %v2887_v48 }
 0x2c7   :  { %v2895_v27 = vpop.permute.xlu1 %2894  ;;  %v2021_v44 = vsel %vm2010_vm1, %v2004_v18, %v2891_v41  ;;  %v2022_v60 = vsel %vm2010_vm1, %v2005_v54, %v2892_v52 }
 0x2c8   :  { %v2900_v55 = vpop.permute.xlu0 %2899  ;;  %v2897_v57 = vunpack.i.h.bf16 %v2895_v27  ;;  %v2896_v58 = vunpack.i.l.bf16 %v2895_v27 }
 0x2c9   :  { %v2902_v15 = vunpack.i.h.bf16 %v2900_v55  ;;  %v2901_v53 = vunpack.i.l.bf16 %v2900_v55 }
 0x2ca   :  { %v4116_v62 = vsel %vm2027_vm2, %v2021_v44, %v2896_v58  ;;  %v4119_v63 = vsel %vm2027_vm2, %v2022_v60, %v2897_v57 }
 0x2cb   :  { %v2905_v30 = vpop.permute.xlu1 %2904  ;;  %v2049_v28 = vpack.c.bf16 %v4119_v63, %v4116_v62 }
 0x2cc   :  { %v2910_v0 = vpop.permute.xlu0 %2909  ;;  %v2907_v59 = vunpack.i.h.bf16 %v2905_v30  ;;  %v2906_v24 = vunpack.i.l.bf16 %v2905_v30 }
 0x2cd   :  { %v2912_v46 = vunpack.i.h.bf16 %v2910_v0  ;;  %v2911_v25 = vunpack.i.l.bf16 %v2910_v0 }
 0x2cf   :  { %v2915_v10 = vpop.permute.xlu1 %2914 }
 0x2d0   :  { %v2920_v4 = vpop.permute.xlu0 %2919  ;;  %v2917_v31 = vunpack.i.h.bf16 %v2915_v10  ;;  %v2916_v39 = vunpack.i.l.bf16 %v2915_v10 }
 0x2d1   :  { %v2922_v37 = vunpack.i.h.bf16 %v2920_v4  ;;  %v2921_v47 = vunpack.i.l.bf16 %v2920_v4 }
 0x2d3   :  { %v2925_v8 = vpop.permute.xlu1 %2924 }
 0x2d4   :  { %v2930_v16 = vpop.permute.xlu0 %2929  ;;  %v2927_v48 = vunpack.i.h.bf16 %v2925_v8  ;;  %v2926_v1 = vunpack.i.l.bf16 %v2925_v8 }
 0x2d5   :  { %v2932_v43 = vunpack.i.h.bf16 %v2930_v16  ;;  %v2931_v17 = vunpack.i.l.bf16 %v2930_v16 }
 0x2d7   :  { %v2940_v20 = vpop.permute.xlu1 %2939  ;;  %v1927_v11 = vsel %vm891_vm3, %v3951_v42, %v2932_v43  ;;  %v1926_v45 = vsel %vm891_vm3, %v3963_v2, %v2931_v17 }
 0x2d8   :  { %v2935_v22 = vpop.permute.xlu0 %2934  ;;  %v2942_v38 = vunpack.i.h.bf16 %v2940_v20  ;;  %v2941_v32 = vunpack.i.l.bf16 %v2940_v20 }
 0x2d9   :  { %v2937_v61 = vunpack.i.h.bf16 %v2935_v22  ;;  %v2936_v12 = vunpack.i.l.bf16 %v2935_v22 }
 0x2da   :  { %v1942_v49 = vsel %vm925_vm6, %v1926_v45, %v2941_v32  ;;  %v1943_v50 = vsel %vm925_vm6, %v1927_v11, %v2942_v38 }
 0x2db   :  { %v1958_v51 = vsel %vm959_vm8, %v1942_v49, %v2901_v53  ;;  %v1959_v52 = vsel %vm959_vm8, %v1943_v50, %v2902_v15  ;;  %v2017_v41 = vsel %vm2010_vm1, %v4041_v7, %v2936_v12  ;;  %v2018_v18 = vsel %vm2010_vm1, %v4044_v29, %v2937_v61  ;;  %v2945_v42 = vpop.permute.xlu1 %2944 }
 0x2dc   :  { %v2950_v54 = vpop.permute.xlu0 %2949  ;;  %v1974_v2 = vsel %vm993_vm10, %v1958_v51, %v2906_v24  ;;  %v1975_v27 = vsel %vm993_vm10, %v1959_v52, %v2907_v59  ;;  %v2947_v55 = vunpack.i.h.bf16 %v2945_v42  ;;  %v2946_v57 = vunpack.i.l.bf16 %v2945_v42 }
 0x2dd   :  { %v2952_v58 = vunpack.i.h.bf16 %v2950_v54  ;;  %v2951_v44 = vunpack.i.l.bf16 %v2950_v54  ;;  %v1991_v60 = vsel %vm1976_vm14, %v1974_v2, %v2911_v25  ;;  %v1992_v30 = vsel %vm1976_vm14, %v1975_v27, %v2912_v46 }
 0x2de   :  { %v2008_v0 = vsel %vm1993_vm15, %v1991_v60, %v2916_v39  ;;  %v2009_v7 = vsel %vm1993_vm15, %v1992_v30, %v2917_v31  ;;  %v4148_v29 = vsel %vm2027_vm2, %v2017_v41, %v2946_v57  ;;  %v4151_v33 = vsel %vm2027_vm2, %v2018_v18, %v2947_v55 }
 0x2df   :  { %v1956_v10 = vsel %vm959_vm8, %v1940_v19, %v2951_v44  ;;  %v2955_v4 = vpop.permute.xlu1 %2954  ;;  %v2025_v6 = vsel %vm2010_vm1, %v2008_v0, %v2921_v47  ;;  %v2026_v34 = vsel %vm2010_vm1, %v2009_v7, %v2922_v37  ;;  %v1957_v36 = vsel %vm959_vm8, %v1941_v21, %v2952_v58 }
 0x2e0   :  { %v2960_v5 = vpop.permute.xlu0 %2959  ;;  %v2957_v16 = vunpack.i.h.bf16 %v2955_v4  ;;  %v2956_v43 = vunpack.i.l.bf16 %v2955_v4  ;;  %v2042_v53 = vsel %vm2027_vm2, %v2025_v6, %v2926_v1  ;;  %v2043_v59 = vsel %vm2027_vm2, %v2026_v34, %v2927_v48 }
 0x2e1   :  { %v2961_v17 = vunpack.i.l.bf16 %v2960_v5  ;;  %v2962_v15 = vunpack.i.h.bf16 %v2960_v5  ;;  %v2047_v8 = vpack.c.bf16 %v4151_v33, %v4148_v29  ;;  %v2051_v46 = vpack.c.bf16 %v2043_v59, %v2042_v53 }
 0x2e2   :  { %v1972_v19 = vsel %vm993_vm10, %v1956_v10, %v2956_v43  ;;  %v1973_v24 = vsel %vm993_vm10, %v1957_v36, %v2957_v16  ;;  %v2079_v0 = vsel %vm2059_vm4, %v2049_v28, 0 }
 0x2e3   :  { %v2965_v25 = vpop.permute.xlu1 %2964  ;;  %v1989_v21 = vsel %vm1976_vm14, %v1972_v19, %v2961_v17  ;;  %v1990_v38 = vsel %vm1976_vm14, %v1973_v24, %v2962_v15  ;;  %v2085_v12 = vsel %vm2059_vm4, %v2051_v46, 0 }
 0x2e4   :  { %v2970_v31 = vpop.permute.xlu0 %2969  ;;  %v2967_v20 = vunpack.i.h.bf16 %v2965_v25  ;;  %v2966_v22 = vunpack.i.l.bf16 %v2965_v25  ;;  %2420 = vmatpush3.bf16.xpose.msra.mxu1 %v2085_v12 }
 0x2e5   :  { %v2972_v32 = vunpack.i.h.bf16 %v2970_v31  ;;  %v2971_v61 = vunpack.i.l.bf16 %v2970_v31  ;;  %2421 = vmatprep.subr.bf16.mxu1 %v3102_v3 }
 0x2e6   :  { %v2006_v39 = vsel %vm1993_vm15, %v1989_v21, %v2966_v22  ;;  %v2007_v37 = vsel %vm1993_vm15, %v1990_v38, %v2967_v20  ;;  %v2076_v21 = vsel %vm2059_vm4, %v2048_v40, 0 }
 0x2e7   :  { %v2980_v11 = vpop.permute.xlu1 %2979  ;;  %v2023_v49 = vsel %vm2010_vm1, %v2006_v39, %v2971_v61  ;;  %v2024_v50 = vsel %vm2010_vm1, %v2007_v37, %v2972_v32 }
 0x2e8   :  { %v2975_v45 = vpop.permute.xlu0 %2974  ;;  %v2982_v47 = vunpack.i.h.bf16 %v2980_v11  ;;  %v2981_v48 = vunpack.i.l.bf16 %v2980_v11 }
 0x2e9   :  { %v2977_v55 = vunpack.i.h.bf16 %v2975_v45  ;;  %v2976_v57 = vunpack.i.l.bf16 %v2975_v45 }
 0x2ea   :  { %v2040_v51 = vsel %vm2027_vm2, %v2023_v49, %v2981_v48  ;;  %v2041_v52 = vsel %vm2027_vm2, %v2024_v50, %v2982_v47 }
 0x2eb   :  { %v2985_v41 = vpop.permute.xlu1 %2984  ;;  %v2050_v42 = vpack.c.bf16 %v2041_v52, %v2040_v51  ;;  %v1916_v7 = vsel %vm891_vm3, %v4006_v23, %v2976_v57  ;;  %v1917_v1 = vsel %vm891_vm3, %v3983_v14, %v2977_v55 }
 0x2ec   :  { %v2990_v18 = vpop.permute.xlu0 %2989  ;;  %v2987_v58 = vunpack.i.h.bf16 %v2985_v41  ;;  %v2986_v44 = vunpack.i.l.bf16 %v2985_v41 }
 0x2ed   :  { %v2082_v54 = vsel %vm2059_vm4, %v2050_v42, 0  ;;  %v2992_v10 = vunpack.i.h.bf16 %v2990_v18  ;;  %v2991_v4 = vunpack.i.l.bf16 %v2990_v18 }
 0x2ee   :  { %2422 = vmatpush3.bf16.xpose.msra.mxu1 %v2082_v54  ;;  %v1932_v5 = vsel %vm925_vm6, %v1916_v7, %v2986_v44  ;;  %v1933_v6 = vsel %vm925_vm6, %v1917_v1, %v2987_v58 }
 0x2ef   :  { %v2995_v2 = vpop.permute.xlu1 %2994  ;;  %2423 = vmatprep.subr.bf16.mxu1 %v3102_v3  ;;  %v1948_v62 = vsel %vm959_vm8, %v1932_v5, %v2991_v4  ;;  %v1949_v23 = vsel %vm959_vm8, %v1933_v6, %v2992_v10 }
 0x2f0   :  { %v3000_v27 = vpop.permute.xlu0 %2999  ;;  %v2997_v34 = vunpack.i.h.bf16 %v2995_v2  ;;  %v2996_v36 = vunpack.i.l.bf16 %v2995_v2 }
 0x2f1   :  { %v3002_v63 = vunpack.i.h.bf16 %v3000_v27  ;;  %v3001_v28 = vunpack.i.l.bf16 %v3000_v27 }
 0x2f2   :  { %v1964_v14 = vsel %vm993_vm10, %v1948_v62, %v2996_v36  ;;  %v1965_v17 = vsel %vm993_vm10, %v1949_v23, %v2997_v34 }
 0x2f3   :  { %v3005_v60 = vpop.permute.xlu1 %3004  ;;  %v1981_v20 = vsel %vm1976_vm14, %v1964_v14, %v3001_v28  ;;  %v1982_v22 = vsel %vm1976_vm14, %v1965_v17, %v3002_v63 }
 0x2f4   :  { %v3010_v30 = vpop.permute.xlu0 %3009  ;;  %v3007_v15 = vunpack.i.h.bf16 %v3005_v60  ;;  %v3006_v53 = vunpack.i.l.bf16 %v3005_v60 }
 0x2f5   :  { %v3012_v38 = vunpack.i.h.bf16 %v3010_v30  ;;  %v3011_v32 = vunpack.i.l.bf16 %v3010_v30  ;;  %v2073_v30 = vsel %vm2059_vm4, %v2047_v8, 0 }
 0x2f6   :  { %2424 = vmatpush3.bf16.xpose.msra.mxu1 %v2079_v0  ;;  %v1998_v61 = vsel %vm1993_vm15, %v1981_v20, %v3006_v53  ;;  %v1999_v12 = vsel %vm1993_vm15, %v1982_v22, %v3007_v15 }
 0x2f7   :  { %v3015_v16 = vpop.permute.xlu1 %3014  ;;  %2425 = vmatprep.subr.bf16.mxu1 %v3102_v3  ;;  %v2015_v52 = vsel %vm2010_vm1, %v1998_v61, %v3011_v32  ;;  %v2016_v41 = vsel %vm2010_vm1, %v1999_v12, %v3012_v38 }
 0x2f8   :  { %v3020_v43 = vpop.permute.xlu0 %3019  ;;  %v3017_v39 = vunpack.i.h.bf16 %v3015_v16  ;;  %v3016_v37 = vunpack.i.l.bf16 %v3015_v16 }
 0x2f9   :  { %v3022_v59 = vunpack.i.h.bf16 %v3020_v43  ;;  %v3021_v19 = vunpack.i.l.bf16 %v3020_v43  ;;  %v1255_v43 = vld [vmem:[#allocation3] sm:$0xff] }
 0x2fb   :  { %v3025_v24 = vpop.permute.xlu1 %3024  ;;  %v1915_v11 = vsel %vm891_vm3, %v4012_v26, %v3022_v59  ;;  %v1914_v35 = vsel %vm891_vm3, %v4046_v9, %v3021_v19  ;;  %v2032_v26 = vsel %vm2027_vm2, %v2015_v52, %v3016_v37  ;;  %v2033_v9 = vsel %vm2027_vm2, %v2016_v41, %v3017_v39 }
 0x2fc   :  { %v3030_v46 = vpop.permute.xlu0 %3029  ;;  %v3027_v25 = vunpack.i.h.bf16 %v3025_v24  ;;  %v3026_v31 = vunpack.i.l.bf16 %v3025_v24  ;;  %v2046_v0 = vpack.c.bf16 %v2033_v9, %v2032_v26 }
 0x2fd   :  { %v3032_v56 = vunpack.i.h.bf16 %v3030_v46  ;;  %v3031_v40 = vunpack.i.l.bf16 %v3030_v46 }
 0x2fe   :  { %2426 = vmatpush3.bf16.xpose.msra.mxu1 %v2076_v21  ;;  %v1930_v48 = vsel %vm925_vm6, %v1914_v35, %v3026_v31  ;;  %v1931_v49 = vsel %vm925_vm6, %v1915_v11, %v3027_v25  ;;  %v2070_v14 = vsel %vm2059_vm4, %v2046_v0, 0 }
 0x2ff   :  { %v3035_v45 = vpop.permute.xlu1 %3034  ;;  %2427 = vmatprep.subr.bf16.mxu1 %v3102_v3  ;;  %v1946_v18 = vsel %vm959_vm8, %v1930_v48, %v3031_v40  ;;  %v1947_v42 = vsel %vm959_vm8, %v1931_v49, %v3032_v56 }
 0x300   :  { %v3040_v47 = vpop.permute.xlu0 %3039  ;;  %v3037_v50 = vunpack.i.h.bf16 %v3035_v45  ;;  %v3036_v51 = vunpack.i.l.bf16 %v3035_v45 }
 0x301   :  { %v3042_v54 = vunpack.i.h.bf16 %v3040_v47  ;;  %v3041_v2 = vunpack.i.l.bf16 %v3040_v47 }
 0x302   :  { %v1962_v57 = vsel %vm993_vm10, %v1946_v18, %v3036_v51  ;;  %v1963_v58 = vsel %vm993_vm10, %v1947_v42, %v3037_v50 }
 0x303   :  { %v3045_v27 = vpop.permute.xlu1 %3044  ;;  %v1979_v7 = vsel %vm1976_vm14, %v1962_v57, %v3041_v2  ;;  %v1980_v1 = vsel %vm1976_vm14, %v1963_v58, %v3042_v54 }
 0x304   :  { %v3050_v55 = vpop.permute.xlu0 %3049  ;;  %v3047_v44 = vunpack.i.h.bf16 %v3045_v27  ;;  %v3046_v60 = vunpack.i.l.bf16 %v3045_v27 }
 0x305   :  { %v3052_v10 = vunpack.i.h.bf16 %v3050_v55  ;;  %v3051_v4 = vunpack.i.l.bf16 %v3050_v55 }
 0x306   :  { %2428 = vmatpush3.bf16.xpose.msra.mxu1 %v2073_v30  ;;  %v1996_v34 = vsel %vm1993_vm15, %v1979_v7, %v3046_v60  ;;  %v1997_v36 = vsel %vm1993_vm15, %v1980_v1, %v3047_v44  ;;  %v2052_v44 = vld [vmem:[%s4292_s2] sm:$0xf] }
 0x307   :  { %v3055_v5 = vpop.permute.xlu1 %3054  ;;  %2429 = vmatprep.subr.bf16.mxu1 %v3102_v3  ;;  %v2013_v62 = vsel %vm2010_vm1, %v1996_v34, %v3051_v4  ;;  %v2014_v23 = vsel %vm2010_vm1, %v1997_v36, %v3052_v10  ;;  %v2136_v34 = vlaneseq }
 0x308   :  { %v3060_v6 = vpop.permute.xlu0 %3059  ;;  %v3057_v33 = vunpack.i.h.bf16 %v3055_v5  ;;  %v3056_v8 = vunpack.i.l.bf16 %v3055_v5  ;;  %v3118_v5 = vmov 1983009808  }
 0x309   :  { %v3062_v16 = vunpack.i.h.bf16 %v3060_v6  ;;  %v3061_v29 = vunpack.i.l.bf16 %v3060_v6  ;;  %v2134_v6 = vunpack.c.l.s4 %v3118_v5 }
 0x30a   :  { %v2030_v46 = vsel %vm2027_vm2, %v2013_v62, %v3056_v8  ;;  %v2031_v25 = vsel %vm2027_vm2, %v2014_v23, %v3057_v33 }
 0x30b   :  { %v3065_v63 = vpop.permute.xlu1 %3064  ;;  %v1912_v17 = vsel %vm891_vm3, %v1255_v43, %v3061_v29  ;;  %v1913_v15 = vsel %vm891_vm3, %v4051_v13, %v3062_v16  ;;  %v2045_v13 = vpack.c.bf16 %v2031_v25, %v2030_v46  ;;  %v2135_v36 = vunpack.c.0.s8 %v2134_v6 }
 0x30c   :  { %v3070_v28 = vpop.permute.xlu0 %3069  ;;  %v3067_v53 = vunpack.i.h.bf16 %v3065_v63  ;;  %v3066_v59 = vunpack.i.l.bf16 %v3065_v63  ;;  %v2137_v16 = vshrl.u32 %v2136_v34, 7  ;;  %v3119_v29 = vmov 1934713408  }
 0x30d   :  { %v3072_v19 = vunpack.i.h.bf16 %v3070_v28  ;;  %v3071_v24 = vunpack.i.l.bf16 %v3070_v28  ;;  %v2067_v48 = vsel %vm2059_vm4, %v2045_v13, 0  ;;  %v2165_v33 = vunpack.c.l.s4 %v3119_v29 }
 0x30e   :  { %v1928_v31 = vsel %vm925_vm6, %v1912_v17, %v3066_v59  ;;  %v1929_v21 = vsel %vm925_vm6, %v1913_v15, %v3067_v53  ;;  %2430 = vmatpush3.bf16.xpose.msra.mxu1 %v2070_v14  ;;  %v4253_v8 = vsub.s32 %v2135_v36, %v2137_v16 }
 0x30f   :  { %v3075_v20 = vpop.permute.xlu1 %3074  ;;  %2431 = vmatprep.subr.bf16.mxu1 %v3102_v3  ;;  %v1944_v61 = vsel %vm959_vm8, %v1928_v31, %v3071_v24  ;;  %v1945_v12 = vsel %vm959_vm8, %v1929_v21, %v3072_v19  ;;  %v2166_v43 = vunpack.c.0.s8 %v2165_v33 }
 0x310   :  { %v3080_v22 = vpop.permute.xlu0 %3079  ;;  %v3077_v38 = vunpack.i.h.bf16 %v3075_v20  ;;  %v3076_v32 = vunpack.i.l.bf16 %v3075_v20 }
 0x311   :  { %v3082_v39 = vunpack.i.h.bf16 %v3080_v22  ;;  %v3081_v37 = vunpack.i.l.bf16 %v3080_v22  ;;  %v2169_v28 = vsub.s32 %v2166_v43, %v2137_v16 }
 0x312   :  { %v1960_v11 = vsel %vm993_vm10, %v1944_v61, %v3076_v32  ;;  %v1961_v35 = vsel %vm993_vm10, %v1945_v12, %v3077_v38 }
 0x313   :  { %v3085_v56 = vpop.permute.xlu1 %3084  ;;  %v1977_v49 = vsel %vm1976_vm14, %v1960_v11, %v3081_v37  ;;  %v1978_v50 = vsel %vm1976_vm14, %v1961_v35, %v3082_v39 }
 0x314   :  { %v3090_v40 = vpop.permute.xlu0 %3089  ;;  %v3087_v45 = vunpack.i.h.bf16 %v3085_v56  ;;  %v3086_v47 = vunpack.i.l.bf16 %v3085_v56 }
 0x315   :  { %v3092_v51 = vunpack.i.h.bf16 %v3090_v40  ;;  %v3091_v52 = vunpack.i.l.bf16 %v3090_v40 }
 0x316   :  { %v1994_v41 = vsel %vm1993_vm15, %v1977_v49, %v3086_v47  ;;  %v1995_v26 = vsel %vm1993_vm15, %v1978_v50, %v3087_v45  ;;  %2432 = vmatpush3.bf16.xpose.msra.mxu1 %v2067_v48 }
 0x317   :  { %v3095_v9 = vpop.permute.xlu1 %3094  ;;  %2433 = vmatprep.subr.bf16.mxu1 %v3102_v3  ;;  %v2011_v54 = vsel %vm2010_vm1, %v1994_v41, %v3091_v52  ;;  %v2012_v2 = vsel %vm2010_vm1, %v1995_v26, %v3092_v51 }
 0x318   :  { %v3097_v18 = vunpack.i.h.bf16 %v3095_v9  ;;  %v3096_v42 = vunpack.i.l.bf16 %v3095_v9 }
 0x31a   :  { %v2028_v27 = vsel %vm2027_vm2, %v2011_v54, %v3096_v42  ;;  %v2029_v55 = vsel %vm2027_vm2, %v2012_v2, %v3097_v18 }
 0x31b   :  { %v2044_v57 = vpack.c.bf16 %v2029_v55, %v2028_v27 }
 0x31d   :  { %v2064_v58 = vsel %vm2059_vm4, %v2044_v57, 0 }
 0x31e   :  { %2434 = vmatpush3.bf16.xpose.msra.mxu1 %v2064_v58 }
 0x321   :  { %v2057_v60 = vpop.permute.xlu0 %2056 }
 0x325   :  { %2436 = vmatmul.mubr.msk.bf16.vlgmr.msra.gmra.mxu1 %vm2059_vm4, %v2052_v44 }
 0x3e5   :  { %v2121_v30 = vpop.f32.mrf.mxu1 }
 0x3e6   :  { %v2122_v0 = vadd.f32 %v2121_v30, %v2057_v60 }
 0x3e7   :  { %v2437_v7 = vpop.f32.mrf.mxu1 }
 0x3e8   :  { %v2127_v1 = vmax.f32 %v2122_v0, 0.0 }
 0x3e9   :  { %v2124_v10 = vpop.f32.mrf.mxu1 }
 0x3ea   :  { %2129 = vrot.lane.b32.xlu1 %v2127_v1, %s3114_s24  ;;  %v2132_v62 = vcombine.high %v2127_v1, %v3102_v3  ;;  %v2139_v63 = vrot.slane %v2127_v1, %v4253_v8 }
 0x3eb   :  { %v2438_v4 = vpop.f32.mrf.mxu1 }
 0x3ec   :  { %v2146_v15 = vrot.slane %v2132_v62, %v4253_v8 }
 0x45c   :  { %v2130_v23 = vpop.permute.xlu1 %2129 }
 0x45d   :  { %v2147_v14 = vcombine.high %v2130_v23, %v3102_v3  ;;  %v2154_v17 = vrot.slane %v2130_v23, %v4253_v8 }
 0x45f   :  { %v2161_v53 = vrot.slane %v2147_v14, %v4253_v8  ;;  %v2162_v59 = vcombine.low %v2139_v63, %v2154_v17  ;;  %v2163_v19 = vcombine.high %v2139_v63, %v2154_v17 }
 0x461   :  { %v2170_v24 = vrot.slane %v2162_v59, %v2169_v28  ;;  %v2177_v46 = vrot.slane %v2163_v19, %v2169_v28  ;;  %v2178_v25 = vcombine.low %v2146_v15, %v2161_v53  ;;  %v2179_v31 = vcombine.high %v2146_v15, %v2161_v53 }
 0x463   :  { %v2186_v21 = vrot.slane %v2178_v25, %v2169_v28  ;;  %v2193_v20 = vrot.slane %v2179_v31, %v2169_v28  ;;  %v2198_v22 = vcombine.low %v2170_v24, %v2177_v46  ;;  %v2374_v38 = vcombine.high %v2170_v24, %v2177_v46 }
 0x465   :  { %v2205_v32 = vrot.slane %v2198_v22, %v4253_v8  ;;  %v2213_v13 = vrot.slane %v2374_v38, %v4253_v8  ;;  %v2214_v61 = vcombine.low %v2186_v21, %v2193_v20  ;;  %v2375_v12 = vcombine.high %v2186_v21, %v2193_v20 }
 0x467   :  { %v2221_v39 = vrot.slane %v2214_v61, %v4253_v8  ;;  %v2229_v37 = vrot.slane %v2375_v12, %v4253_v8  ;;  %v2230_v11 = vcombine.low %v2205_v32, %v2213_v13 }
 0x469   :  { %v2238_v35 = vcombine.low %v2221_v39, %v2229_v37  ;;  %v2237_v56 = vrot.slane %v2230_v11, %v2169_v28 }
 0x46b   :  { %v2245_v40 = vrot.slane %v2238_v35, %v2169_v28 }
 0x46d   :  { %v2246_v45 = vcombine.low %v2237_v56, %v2245_v40  ;;  %v2247_v47 = vcombine.high %v2237_v56, %v2245_v40  ;;  %v2376_v48 = vcombine.high %v2245_v40, %v3102_v3 }
 0x46f   :  { %v2255_v49 = vrot.slane %v2246_v45, %v4253_v8  ;;  %v2270_v50 = vrot.slane %v2247_v47, %v4253_v8  ;;  %v2248_v51 = vcombine.high %v2246_v45, %v3102_v3  ;;  %v2277_v9 = vrot.slane %v2376_v48, %v4253_v8 }
 0x471   :  { %v2279_v52 = vcombine.high %v2255_v49, %v2270_v50  ;;  %v2278_v41 = vcombine.low %v2255_v49, %v2270_v50  ;;  %v2262_v26 = vrot.slane %v2248_v51, %v4253_v8 }
 0x473   :  { %v2293_v18 = vrot.slane %v2279_v52, %v2169_v28  ;;  %v2286_v42 = vrot.slane %v2278_v41, %v2169_v28  ;;  %v2295_v54 = vcombine.high %v2262_v26, %v2277_v9  ;;  %v2294_v2 = vcombine.low %v2262_v26, %v2277_v9 }
 0x475   :  { %v2311_v27 = vcombine.high %v2293_v18, %v3102_v3  ;;  %v2310_v55 = vcombine.high %v2286_v42, %v3102_v3  ;;  %v2309_v57 = vrot.slane %v2295_v54, %v2169_v28  ;;  %v2302_v58 = vrot.slane %v2294_v2, %v2169_v28 }
 0x477   :  { %2319 = vrot.lane.b32.xlu0 %v2311_v27, %s3114_s24  ;;  %2315 = vrot.lane.b32.xlu1 %v2310_v55, %s3114_s24  ;;  %v2313_v44 = vcombine.high %v2309_v57, %v3102_v3  ;;  %v2312_v60 = vcombine.high %v2302_v58, %v3102_v3 }
 0x47b   :  { %2327 = vrot.lane.b32.xlu0 %v2313_v44, %s3114_s24  ;;  %2323 = vrot.lane.b32.xlu1 %v2312_v60, %s3114_s24 }
 0x4e9   :  { %v2320_v30 = vpop.permute.xlu0 %2319  ;;  %v2316_v0 = vpop.permute.xlu1 %2315 }
 0x4ea   :  { %v2331_v7 = vsel %vm2027_vm2, %v2293_v18, %v2320_v30  ;;  %v2330_v1 = vsel %vm2027_vm2, %v2286_v42, %v2316_v0 }
 0x4eb   :  { %v2338_v10 = vcombine.low %v2330_v1, %v2331_v7 }
 0x4ed   :  { %v2328_v4 = vpop.permute.xlu0 %2327  ;;  %v2324_v5 = vpop.permute.xlu1 %2323  ;;  %v2346_v3 = vrot.slane %v2338_v10, %v4253_v8 }
 0x4ee   :  { %v2333_v6 = vsel %vm2027_vm2, %v2309_v57, %v2328_v4  ;;  %v2332_v34 = vsel %vm2027_vm2, %v2302_v58, %v2324_v5 }
 0x4ef   :  { %v2339_v36 = vcombine.low %v2332_v34, %v2333_v6 }
 0x4f1   :  { %v2353_v16 = vrot.slane %v2339_v36, %v4253_v8 }
 0x4f3   :  { %v2354_v29 = vcombine.low %v2346_v3, %v2353_v16 }
 0x4f5   :  { %2356 = vst [vmem:[%s4293_s5] sm:$0xff] %v2354_v29 }

</bundles_post_ra>
